<compile_context>
chip_gen: v6e
topology: v6e:2x2x1
jax: 0.10.0
libtpu: 0.0.40
codegen_flags: <defaults>
</compile_context>

<pallas_src>
import jax
import jax.numpy as jnp
from jax import lax
from jax.experimental import pallas as pl
from jax.experimental.pallas import tpu as pltpu

EMBED_DIM = 128      # embedding_dim in the PyTorch module
MAX_SEQ_LEN = 512    # max_seq_length in the PyTorch module


def _round_up(x: int, m: int) -> int:
    return ((x + m - 1) // m) * m


def _for_each_row(tile_s: int, body):
    """Run `body(i)` for i in [0, tile_s). Static unroll for small tiles,
    bounded-unroll fori_loop for large ones (keeps code size in check)."""
    if tile_s <= 64:
        for i in range(tile_s):
            body(i)
    else:
        lax.fori_loop(0, tile_s, lambda i, c: (body(i), c)[1], 0, unroll=8)


def _fast_kernel_factory(tile_s: int, vocab_size: int, out_dtype):
    """VMEM-resident table: gather = per-row dynamic VMEM reads (no DMAs)."""
    def kernel(ids_ref, pid_ref, tok_ref, pos_ref, out_ref):
        # ids_ref/pid_ref : (padded_N,) int32 in SMEM (scalar prefetch)
        # tok_ref         : (V, D) embedding table, VMEM-resident (constant block)
        # pos_ref         : (S, D) positional rows, VMEM-resident (constant block)
        # out_ref         : (tile_s, D) output tile
        t0 = pl.program_id(0) * tile_s

        def row(i):
            tok_id = jnp.clip(ids_ref[t0 + i], 0, vocab_size - 1)  # clamp, not raise
            pos_id = pid_ref[t0 + i]
            out_ref[pl.ds(i, 1), :] = (
                tok_ref[pl.ds(tok_id, 1), :].astype(out_dtype)
                + pos_ref[pl.ds(pos_id, 1), :].astype(out_dtype))

        _for_each_row(tile_s, row)

    return kernel


def _dma_kernel_factory(tile_s: int, vocab_size: int, out_dtype, wave: int):
    """Large-vocab fallback: table stays in HBM; rows gathered via bounded
    waves of async row copies into a VMEM scratch buffer."""
    def kernel(ids_ref, pid_ref, tok_hbm, pos_ref, out_ref, buf, sems):
        t0 = pl.program_id(0) * tile_s

        # Row gather: `wave` DMAs in flight per wave (bounded code size / sems).
        # TODO(synk): overlap the next grid step's gather with this step's
        # add/store (cross-step double buffering) and pack rows via
        # pltpu.bitcast for bf16/int8 tables (per-row DMAs land mid-sublane).
        for w in range(tile_s // wave):
            copies = []
            for j in range(wave):
                i = w * wave + j
                tok_id = jnp.clip(ids_ref[t0 + i], 0, vocab_size - 1)
                cp = pltpu.make_async_copy(tok_hbm.at[tok_id], buf.at[i], sems.at[j])
                cp.start()
                copies.append(cp)
            for cp in copies:
                cp.wait()

        def row(i):
            pos_id = pid_ref[t0 + i]
            out_ref[pl.ds(i, 1), :] = (
                buf[pl.ds(i, 1), :].astype(out_dtype)
                + pos_ref[pl.ds(pos_id, 1), :].astype(out_dtype))

        _for_each_row(tile_s, row)

    return kernel


def input_embedding(token_ids, tok_table, pos_table, *, force_hbm_gather=False):
    """token_ids: (B, S) int; tok_table: (V, D); pos_table: (>=S, D)."""
    B, S = token_ids.shape
    V, D = tok_table.shape
    assert pos_table.shape[0] >= S and pos_table.shape[1] == D

    out_dtype = jnp.result_type(tok_table.dtype, pos_table.dtype)
    itemsize = jnp.dtype(out_dtype).itemsize
    sublane = {4: 8, 2: 16, 1: 32}.get(itemsize, 8)     # dtype-aware sublane tile

    # Flattened row tiling: fixed large tile, decoupled from S's divisors.
    N = B * S
    tile_s = min(128, _round_up(N, sublane))
    tile_s = _round_up(tile_s, sublane)
    num_tiles = pl.cdiv(N, tile_s)
    padded_n = num_tiles * tile_s

    ids_flat = jnp.pad(token_ids.reshape(-1).astype(jnp.int32), (0, padded_n - N))
    pos_ids = jnp.arange(padded_n, dtype=jnp.int32) % S   # pos index of flat row n
    pos_slice = pos_table[:S]                              # only S rows ever move

    # ---- VMEM-residency gating (v7x: 64 MiB/TC, v5e/v6e: 128 MiB). ----
    tok_bytes = V * D * jnp.dtype(tok_table.dtype).itemsize
    pos_bytes = S * D * jnp.dtype(pos_slice.dtype).itemsize
    out_tile_bytes = tile_s * D * itemsize
    base_bytes = 2 * pos_bytes + 2 * out_tile_bytes + (1 << 20)   # x2: double buffering
    fast_resident = base_bytes + 2 * tok_bytes
    try:
        vmem_cap = pltpu.get_tpu_info().vmem_capacity_bytes
    except Exception:
        vmem_cap = 64 << 20            # conservative: v7x floor
    budget = (vmem_cap * 3) // 4
    use_fast = (fast_resident <= budget) and not force_hbm_gather

    if use_fast:
        need = fast_resident
        kernel = _fast_kernel_factory(tile_s, V, out_dtype)
        tok_spec = pl.BlockSpec((V, D), lambda t, ids, pids: (0, 0))   # whole table resident
        scratch = []
    else:
        gather_buf_bytes = tile_s * D * jnp.dtype(tok_table.dtype).itemsize
        need = base_bytes + 2 * gather_buf_bytes
        wave = 8
        kernel = _dma_kernel_factory(tile_s, V, out_dtype, wave)
        tok_spec = pl.BlockSpec(memory_space=pl.ANY)                   # table stays in HBM
        scratch = [pltpu.VMEM((tile_s, D), tok_table.dtype),
                   pltpu.SemaphoreType.DMA((wave,))]

    vmem_limit = int(min(budget, max(32 << 20, need + (4 << 20))))

    out = pl.pallas_call(
        kernel,
        out_shape=jax.ShapeDtypeStruct((padded_n, D), out_dtype),
        grid_spec=pltpu.PrefetchScalarGridSpec(
            num_scalar_prefetch=2,                         # token ids + pos ids -> SMEM
            grid=(num_tiles,),                             # one flattened parallel axis
            in_specs=[
                tok_spec,
                pl.BlockSpec((S, D), lambda t, ids, pids: (0, 0)),     # pos resident
            ],
            out_specs=pl.BlockSpec((tile_s, D), lambda t, ids, pids: (t, 0)),
            scratch_shapes=scratch,
        ),
        compiler_params=pltpu.CompilerParams(
            dimension_semantics=("parallel",),
            vmem_limit_bytes=vmem_limit,
        ),
    )(ids_flat, pos_ids, tok_table, pos_slice)

    return out[:N].reshape(B, S, D)


if __name__ == "__main__":
    # Small synthetic shapes consistent with the module's forward:
    # batch=2 contexts, seq=16 tokens, synthetic vocab=512, embed=128.
    # (BertTokenizer is host-side preprocessing; replaced with synthetic ids.)
    B, S, V, D = 2, 16, 512, EMBED_DIM

    key = jax.random.PRNGKey(0)
    k_tok, k_pos, k_ids = jax.random.split(key, 3)

    tok_table = jax.random.normal(k_tok, (V, D), dtype=jnp.float32)
    pos_table = jax.random.normal(k_pos, (MAX_SEQ_LEN, D), dtype=jnp.float32)
    token_ids = jax.random.randint(k_ids, (B, S), 0, V, dtype=jnp.int32)

    ref = tok_table[token_ids] + pos_table[None, :S, :]

    # Fast (VMEM-resident table) path -- the one selected automatically here.
    out = jax.block_until_ready(input_embedding(token_ids, tok_table, pos_table))
    assert out.shape == (B, S, D)
    assert out.dtype == ref.dtype
    assert jnp.allclose(out, ref, atol=1e-5, rtol=1e-5), "fast-path output mismatch"

    # Large-vocab fallback path (HBM DMA row gather), forced for coverage.
    out_fb = jax.block_until_ready(
        input_embedding(token_ids, tok_table, pos_table, force_hbm_gather=True))
    assert jnp.allclose(out_fb, ref, atol=1e-5, rtol=1e-5), "fallback output mismatch"

    print("KERNEL_OK")
</pallas_src>

<mosaic_0001>
module attributes {stable_mosaic.version = 11 : i64} {
  func.func @kernel(%arg0: i32, %arg1: memref<32xi32, #tpu.memory_space<smem>>, %arg2: memref<32xi32, #tpu.memory_space<smem>>, %arg3: memref<512x128xf32, #tpu.memory_space<vmem>>, %arg4: memref<16x128xf32, #tpu.memory_space<vmem>>, %arg5: memref<32x128xf32, #tpu.memory_space<vmem>>) attributes {dimension_semantics = [#tpu.dimension_semantics<parallel>], iteration_bounds = array<i64: 1>, scalar_prefetch = 2 : i64, scratch_operands = 0 : i64, tpu.core_type = #tpu.core_type<tc>, window_params = [{pipeline_mode = #tpu.pipeline_mode<synchronous>, transform_indices = @transform_0, window_bounds = array<i64: 512, 128>}, {pipeline_mode = #tpu.pipeline_mode<synchronous>, transform_indices = @transform_1, window_bounds = array<i64: 16, 128>}, {transform_indices = @transform_2, window_bounds = array<i64: 32, 128>}]} {
    %c32_i32 = arith.constant 32 : i32
    %0 = arith.muli %arg0, %c32_i32 : i32
    %c0_i32 = arith.constant 0 : i32
    %1 = arith.addi %0, %c0_i32 : i32
    %2 = arith.index_cast %1 : i32 to index
    %3 = memref.load %arg1[%2] : memref<32xi32, #tpu.memory_space<smem>>
    %c0_i32_0 = arith.constant 0 : i32
    %c511_i32 = arith.constant 511 : i32
    %4 = arith.maxsi %c0_i32_0, %3 : i32
    %5 = arith.minsi %c511_i32, %4 : i32
    %c0_i32_1 = arith.constant 0 : i32
    %6 = arith.addi %0, %c0_i32_1 : i32
    %7 = arith.index_cast %6 : i32 to index
    %8 = memref.load %arg2[%7] : memref<32xi32, #tpu.memory_space<smem>>
    %9 = arith.index_cast %5 : i32 to index
    %c0 = arith.constant 0 : index
    %10 = vector.load %arg3[%9, %c0] : memref<512x128xf32, #tpu.memory_space<vmem>>, vector<1x128xf32>
    %11 = arith.index_cast %8 : i32 to index
    %c0_2 = arith.constant 0 : index
    %12 = vector.load %arg4[%11, %c0_2] : memref<16x128xf32, #tpu.memory_space<vmem>>, vector<1x128xf32>
    %13 = arith.addf %10, %12 : vector<1x128xf32>
    %c0_3 = arith.constant 0 : index
    %c0_4 = arith.constant 0 : index
    %14 = vector.load %arg5[%c0_3, %c0_4] : memref<32x128xf32, #tpu.memory_space<vmem>>, vector<1x128xf32>
    tpu.vector_store %arg5[%c0_3, %c0_4], %13 {strides = array<i32>} : memref<32x128xf32, #tpu.memory_space<vmem>>, vector<1x128xf32>,
    %c1_i32 = arith.constant 1 : i32
    %15 = arith.addi %0, %c1_i32 : i32
    %16 = arith.index_cast %15 : i32 to index
    %17 = memref.load %arg1[%16] : memref<32xi32, #tpu.memory_space<smem>>
    %c0_i32_5 = arith.constant 0 : i32
    %c511_i32_6 = arith.constant 511 : i32
    %18 = arith.maxsi %c0_i32_5, %17 : i32
    %19 = arith.minsi %c511_i32_6, %18 : i32
    %c1_i32_7 = arith.constant 1 : i32
    %20 = arith.addi %0, %c1_i32_7 : i32
    %21 = arith.index_cast %20 : i32 to index
    %22 = memref.load %arg2[%21] : memref<32xi32, #tpu.memory_space<smem>>
    %23 = arith.index_cast %19 : i32 to index
    %c0_8 = arith.constant 0 : index
    %24 = vector.load %arg3[%23, %c0_8] : memref<512x128xf32, #tpu.memory_space<vmem>>, vector<1x128xf32>
    %25 = arith.index_cast %22 : i32 to index
    %c0_9 = arith.constant 0 : index
    %26 = vector.load %arg4[%25, %c0_9] : memref<16x128xf32, #tpu.memory_space<vmem>>, vector<1x128xf32>
    %27 = arith.addf %24, %26 : vector<1x128xf32>
    %c1 = arith.constant 1 : index
    %c0_10 = arith.constant 0 : index
    %28 = vector.load %arg5[%c1, %c0_10] : memref<32x128xf32, #tpu.memory_space<vmem>>, vector<1x128xf32>
    tpu.vector_store %arg5[%c1, %c0_10], %27 {strides = array<i32>} : memref<32x128xf32, #tpu.memory_space<vmem>>, vector<1x128xf32>,
    %c2_i32 = arith.constant 2 : i32
    %29 = arith.addi %0, %c2_i32 : i32
    %30 = arith.index_cast %29 : i32 to index
    %31 = memref.load %arg1[%30] : memref<32xi32, #tpu.memory_space<smem>>
    %c0_i32_11 = arith.constant 0 : i32
    %c511_i32_12 = arith.constant 511 : i32
    %32 = arith.maxsi %c0_i32_11, %31 : i32
    %33 = arith.minsi %c511_i32_12, %32 : i32
    %c2_i32_13 = arith.constant 2 : i32
    %34 = arith.addi %0, %c2_i32_13 : i32
    %35 = arith.index_cast %34 : i32 to index
    %36 = memref.load %arg2[%35] : memref<32xi32, #tpu.memory_space<smem>>
    %37 = arith.index_cast %33 : i32 to index
    %c0_14 = arith.constant 0 : index
    %38 = vector.load %arg3[%37, %c0_14] : memref<512x128xf32, #tpu.memory_space<vmem>>, vector<1x128xf32>
    %39 = arith.index_cast %36 : i32 to index
    %c0_15 = arith.constant 0 : index
    %40 = vector.load %arg4[%39, %c0_15] : memref<16x128xf32, #tpu.memory_space<vmem>>, vector<1x128xf32>
    %41 = arith.addf %38, %40 : vector<1x128xf32>
    %c2 = arith.constant 2 : index
    %c0_16 = arith.constant 0 : index
    %42 = vector.load %arg5[%c2, %c0_16] : memref<32x128xf32, #tpu.memory_space<vmem>>, vector<1x128xf32>
    tpu.vector_store %arg5[%c2, %c0_16], %41 {strides = array<i32>} : memref<32x128xf32, #tpu.memory_space<vmem>>, vector<1x128xf32>,
    %c3_i32 = arith.constant 3 : i32
    %43 = arith.addi %0, %c3_i32 : i32
    %44 = arith.index_cast %43 : i32 to index
    %45 = memref.load %arg1[%44] : memref<32xi32, #tpu.memory_space<smem>>
    %c0_i32_17 = arith.constant 0 : i32
    %c511_i32_18 = arith.constant 511 : i32
    %46 = arith.maxsi %c0_i32_17, %45 : i32
    %47 = arith.minsi %c511_i32_18, %46 : i32
    %c3_i32_19 = arith.constant 3 : i32
    %48 = arith.addi %0, %c3_i32_19 : i32
    %49 = arith.index_cast %48 : i32 to index
    %50 = memref.load %arg2[%49] : memref<32xi32, #tpu.memory_space<smem>>
    %51 = arith.index_cast %47 : i32 to index
    %c0_20 = arith.constant 0 : index
    %52 = vector.load %arg3[%51, %c0_20] : memref<512x128xf32, #tpu.memory_space<vmem>>, vector<1x128xf32>
    %53 = arith.index_cast %50 : i32 to index
    %c0_21 = arith.constant 0 : index
    %54 = vector.load %arg4[%53, %c0_21] : memref<16x128xf32, #tpu.memory_space<vmem>>, vector<1x128xf32>
    %55 = arith.addf %52, %54 : vector<1x128xf32>
    %c3 = arith.constant 3 : index
    %c0_22 = arith.constant 0 : index
    %56 = vector.load %arg5[%c3, %c0_22] : memref<32x128xf32, #tpu.memory_space<vmem>>, vector<1x128xf32>
    tpu.vector_store %arg5[%c3, %c0_22], %55 {strides = array<i32>} : memref<32x128xf32, #tpu.memory_space<vmem>>, vector<1x128xf32>,
    %c4_i32 = arith.constant 4 : i32
    %57 = arith.addi %0, %c4_i32 : i32
    %58 = arith.index_cast %57 : i32 to index
    %59 = memref.load %arg1[%58] : memref<32xi32, #tpu.memory_space<smem>>
    %c0_i32_23 = arith.constant 0 : i32
    %c511_i32_24 = arith.constant 511 : i32
    %60 = arith.maxsi %c0_i32_23, %59 : i32
    %61 = arith.minsi %c511_i32_24, %60 : i32
    %c4_i32_25 = arith.constant 4 : i32
    %62 = arith.addi %0, %c4_i32_25 : i32
    %63 = arith.index_cast %62 : i32 to index
    %64 = memref.load %arg2[%63] : memref<32xi32, #tpu.memory_space<smem>>
    %65 = arith.index_cast %61 : i32 to index
    %c0_26 = arith.constant 0 : index
    %66 = vector.load %arg3[%65, %c0_26] : memref<512x128xf32, #tpu.memory_space<vmem>>, vector<1x128xf32>
    %67 = arith.index_cast %64 : i32 to index
    %c0_27 = arith.constant 0 : index
    %68 = vector.load %arg4[%67, %c0_27] : memref<16x128xf32, #tpu.memory_space<vmem>>, vector<1x128xf32>
    %69 = arith.addf %66, %68 : vector<1x128xf32>
    %c4 = arith.constant 4 : index
    %c0_28 = arith.constant 0 : index
    %70 = vector.load %arg5[%c4, %c0_28] : memref<32x128xf32, #tpu.memory_space<vmem>>, vector<1x128xf32>
    tpu.vector_store %arg5[%c4, %c0_28], %69 {strides = array<i32>} : memref<32x128xf32, #tpu.memory_space<vmem>>, vector<1x128xf32>,
    %c5_i32 = arith.constant 5 : i32
    %71 = arith.addi %0, %c5_i32 : i32
    %72 = arith.index_cast %71 : i32 to index
    %73 = memref.load %arg1[%72] : memref<32xi32, #tpu.memory_space<smem>>
    %c0_i32_29 = arith.constant 0 : i32
    %c511_i32_30 = arith.constant 511 : i32
    %74 = arith.maxsi %c0_i32_29, %73 : i32
    %75 = arith.minsi %c511_i32_30, %74 : i32
    %c5_i32_31 = arith.constant 5 : i32
    %76 = arith.addi %0, %c5_i32_31 : i32
    %77 = arith.index_cast %76 : i32 to index
    %78 = memref.load %arg2[%77] : memref<32xi32, #tpu.memory_space<smem>>
    %79 = arith.index_cast %75 : i32 to index
    %c0_32 = arith.constant 0 : index
    %80 = vector.load %arg3[%79, %c0_32] : memref<512x128xf32, #tpu.memory_space<vmem>>, vector<1x128xf32>
    %81 = arith.index_cast %78 : i32 to index
    %c0_33 = arith.constant 0 : index
    %82 = vector.load %arg4[%81, %c0_33] : memref<16x128xf32, #tpu.memory_space<vmem>>, vector<1x128xf32>
    %83 = arith.addf %80, %82 : vector<1x128xf32>
    %c5 = arith.constant 5 : index
    %c0_34 = arith.constant 0 : index
    %84 = vector.load %arg5[%c5, %c0_34] : memref<32x128xf32, #tpu.memory_space<vmem>>, vector<1x128xf32>
    tpu.vector_store %arg5[%c5, %c0_34], %83 {strides = array<i32>} : memref<32x128xf32, #tpu.memory_space<vmem>>, vector<1x128xf32>,
    %c6_i32 = arith.constant 6 : i32
    %85 = arith.addi %0, %c6_i32 : i32
    %86 = arith.index_cast %85 : i32 to index
    %87 = memref.load %arg1[%86] : memref<32xi32, #tpu.memory_space<smem>>
    %c0_i32_35 = arith.constant 0 : i32
    %c511_i32_36 = arith.constant 511 : i32
    %88 = arith.maxsi %c0_i32_35, %87 : i32
    %89 = arith.minsi %c511_i32_36, %88 : i32
    %c6_i32_37 = arith.constant 6 : i32
    %90 = arith.addi %0, %c6_i32_37 : i32
    %91 = arith.index_cast %90 : i32 to index
    %92 = memref.load %arg2[%91] : memref<32xi32, #tpu.memory_space<smem>>
    %93 = arith.index_cast %89 : i32 to index
    %c0_38 = arith.constant 0 : index
    %94 = vector.load %arg3[%93, %c0_38] : memref<512x128xf32, #tpu.memory_space<vmem>>, vector<1x128xf32>
    %95 = arith.index_cast %92 : i32 to index
    %c0_39 = arith.constant 0 : index
    %96 = vector.load %arg4[%95, %c0_39] : memref<16x128xf32, #tpu.memory_space<vmem>>, vector<1x128xf32>
    %97 = arith.addf %94, %96 : vector<1x128xf32>
    %c6 = arith.constant 6 : index
    %c0_40 = arith.constant 0 : index
    %98 = vector.load %arg5[%c6, %c0_40] : memref<32x128xf32, #tpu.memory_space<vmem>>, vector<1x128xf32>
    tpu.vector_store %arg5[%c6, %c0_40], %97 {strides = array<i32>} : memref<32x128xf32, #tpu.memory_space<vmem>>, vector<1x128xf32>,
    %c7_i32 = arith.constant 7 : i32
    %99 = arith.addi %0, %c7_i32 : i32
    %100 = arith.index_cast %99 : i32 to index
    %101 = memref.load %arg1[%100] : memref<32xi32, #tpu.memory_space<smem>>
    %c0_i32_41 = arith.constant 0 : i32
    %c511_i32_42 = arith.constant 511 : i32
    %102 = arith.maxsi %c0_i32_41, %101 : i32
    %103 = arith.minsi %c511_i32_42, %102 : i32
    %c7_i32_43 = arith.constant 7 : i32
    %104 = arith.addi %0, %c7_i32_43 : i32
    %105 = arith.index_cast %104 : i32 to index
    %106 = memref.load %arg2[%105] : memref<32xi32, #tpu.memory_space<smem>>
    %107 = arith.index_cast %103 : i32 to index
    %c0_44 = arith.constant 0 : index
    %108 = vector.load %arg3[%107, %c0_44] : memref<512x128xf32, #tpu.memory_space<vmem>>, vector<1x128xf32>
    %109 = arith.index_cast %106 : i32 to index
    %c0_45 = arith.constant 0 : index
    %110 = vector.load %arg4[%109, %c0_45] : memref<16x128xf32, #tpu.memory_space<vmem>>, vector<1x128xf32>
    %111 = arith.addf %108, %110 : vector<1x128xf32>
    %c7 = arith.constant 7 : index
    %c0_46 = arith.constant 0 : index
    %112 = vector.load %arg5[%c7, %c0_46] : memref<32x128xf32, #tpu.memory_space<vmem>>, vector<1x128xf32>
    tpu.vector_store %arg5[%c7, %c0_46], %111 {strides = array<i32>} : memref<32x128xf32, #tpu.memory_space<vmem>>, vector<1x128xf32>,
    %c8_i32 = arith.constant 8 : i32
    %113 = arith.addi %0, %c8_i32 : i32
    %114 = arith.index_cast %113 : i32 to index
    %115 = memref.load %arg1[%114] : memref<32xi32, #tpu.memory_space<smem>>
    %c0_i32_47 = arith.constant 0 : i32
    %c511_i32_48 = arith.constant 511 : i32
    %116 = arith.maxsi %c0_i32_47, %115 : i32
    %117 = arith.minsi %c511_i32_48, %116 : i32
    %c8_i32_49 = arith.constant 8 : i32
    %118 = arith.addi %0, %c8_i32_49 : i32
    %119 = arith.index_cast %118 : i32 to index
    %120 = memref.load %arg2[%119] : memref<32xi32, #tpu.memory_space<smem>>
    %121 = arith.index_cast %117 : i32 to index
    %c0_50 = arith.constant 0 : index
    %122 = vector.load %arg3[%121, %c0_50] : memref<512x128xf32, #tpu.memory_space<vmem>>, vector<1x128xf32>
    %123 = arith.index_cast %120 : i32 to index
    %c0_51 = arith.constant 0 : index
    %124 = vector.load %arg4[%123, %c0_51] : memref<16x128xf32, #tpu.memory_space<vmem>>, vector<1x128xf32>
    %125 = arith.addf %122, %124 : vector<1x128xf32>
    %c8 = arith.constant 8 : index
    %c0_52 = arith.constant 0 : index
    %126 = vector.load %arg5[%c8, %c0_52] : memref<32x128xf32, #tpu.memory_space<vmem>>, vector<1x128xf32>
    tpu.vector_store %arg5[%c8, %c0_52], %125 {strides = array<i32>} : memref<32x128xf32, #tpu.memory_space<vmem>>, vector<1x128xf32>,
    %c9_i32 = arith.constant 9 : i32
    %127 = arith.addi %0, %c9_i32 : i32
    %128 = arith.index_cast %127 : i32 to index
    %129 = memref.load %arg1[%128] : memref<32xi32, #tpu.memory_space<smem>>
    %c0_i32_53 = arith.constant 0 : i32
    %c511_i32_54 = arith.constant 511 : i32
    %130 = arith.maxsi %c0_i32_53, %129 : i32
    %131 = arith.minsi %c511_i32_54, %130 : i32
    %c9_i32_55 = arith.constant 9 : i32
    %132 = arith.addi %0, %c9_i32_55 : i32
    %133 = arith.index_cast %132 : i32 to index
    %134 = memref.load %arg2[%133] : memref<32xi32, #tpu.memory_space<smem>>
    %135 = arith.index_cast %131 : i32 to index
    %c0_56 = arith.constant 0 : index
    %136 = vector.load %arg3[%135, %c0_56] : memref<512x128xf32, #tpu.memory_space<vmem>>, vector<1x128xf32>
    %137 = arith.index_cast %134 : i32 to index
    %c0_57 = arith.constant 0 : index
    %138 = vector.load %arg4[%137, %c0_57] : memref<16x128xf32, #tpu.memory_space<vmem>>, vector<1x128xf32>
    %139 = arith.addf %136, %138 : vector<1x128xf32>
    %c9 = arith.constant 9 : index
    %c0_58 = arith.constant 0 : index
    %140 = vector.load %arg5[%c9, %c0_58] : memref<32x128xf32, #tpu.memory_space<vmem>>, vector<1x128xf32>
    tpu.vector_store %arg5[%c9, %c0_58], %139 {strides = array<i32>} : memref<32x128xf32, #tpu.memory_space<vmem>>, vector<1x128xf32>,
    %c10_i32 = arith.constant 10 : i32
    %141 = arith.addi %0, %c10_i32 : i32
    %142 = arith.index_cast %141 : i32 to index
    %143 = memref.load %arg1[%142] : memref<32xi32, #tpu.memory_space<smem>>
    %c0_i32_59 = arith.constant 0 : i32
    %c511_i32_60 = arith.constant 511 : i32
    %144 = arith.maxsi %c0_i32_59, %143 : i32
    %145 = arith.minsi %c511_i32_60, %144 : i32
    %c10_i32_61 = arith.constant 10 : i32
    %146 = arith.addi %0, %c10_i32_61 : i32
    %147 = arith.index_cast %146 : i32 to index
    %148 = memref.load %arg2[%147] : memref<32xi32, #tpu.memory_space<smem>>
    %149 = arith.index_cast %145 : i32 to index
    %c0_62 = arith.constant 0 : index
    %150 = vector.load %arg3[%149, %c0_62] : memref<512x128xf32, #tpu.memory_space<vmem>>, vector<1x128xf32>
    %151 = arith.index_cast %148 : i32 to index
    %c0_63 = arith.constant 0 : index
    %152 = vector.load %arg4[%151, %c0_63] : memref<16x128xf32, #tpu.memory_space<vmem>>, vector<1x128xf32>
    %153 = arith.addf %150, %152 : vector<1x128xf32>
    %c10 = arith.constant 10 : index
    %c0_64 = arith.constant 0 : index
    %154 = vector.load %arg5[%c10, %c0_64] : memref<32x128xf32, #tpu.memory_space<vmem>>, vector<1x128xf32>
    tpu.vector_store %arg5[%c10, %c0_64], %153 {strides = array<i32>} : memref<32x128xf32, #tpu.memory_space<vmem>>, vector<1x128xf32>,
    %c11_i32 = arith.constant 11 : i32
    %155 = arith.addi %0, %c11_i32 : i32
    %156 = arith.index_cast %155 : i32 to index
    %157 = memref.load %arg1[%156] : memref<32xi32, #tpu.memory_space<smem>>
    %c0_i32_65 = arith.constant 0 : i32
    %c511_i32_66 = arith.constant 511 : i32
    %158 = arith.maxsi %c0_i32_65, %157 : i32
    %159 = arith.minsi %c511_i32_66, %158 : i32
    %c11_i32_67 = arith.constant 11 : i32
    %160 = arith.addi %0, %c11_i32_67 : i32
    %161 = arith.index_cast %160 : i32 to index
    %162 = memref.load %arg2[%161] : memref<32xi32, #tpu.memory_space<smem>>
    %163 = arith.index_cast %159 : i32 to index
    %c0_68 = arith.constant 0 : index
    %164 = vector.load %arg3[%163, %c0_68] : memref<512x128xf32, #tpu.memory_space<vmem>>, vector<1x128xf32>
    %165 = arith.index_cast %162 : i32 to index
    %c0_69 = arith.constant 0 : index
    %166 = vector.load %arg4[%165, %c0_69] : memref<16x128xf32, #tpu.memory_space<vmem>>, vector<1x128xf32>
    %167 = arith.addf %164, %166 : vector<1x128xf32>
    %c11 = arith.constant 11 : index
    %c0_70 = arith.constant 0 : index
    %168 = vector.load %arg5[%c11, %c0_70] : memref<32x128xf32, #tpu.memory_space<vmem>>, vector<1x128xf32>
    tpu.vector_store %arg5[%c11, %c0_70], %167 {strides = array<i32>} : memref<32x128xf32, #tpu.memory_space<vmem>>, vector<1x128xf32>,
    %c12_i32 = arith.constant 12 : i32
    %169 = arith.addi %0, %c12_i32 : i32
    %170 = arith.index_cast %169 : i32 to index
    %171 = memref.load %arg1[%170] : memref<32xi32, #tpu.memory_space<smem>>
    %c0_i32_71 = arith.constant 0 : i32
    %c511_i32_72 = arith.constant 511 : i32
    %172 = arith.maxsi %c0_i32_71, %171 : i32
    %173 = arith.minsi %c511_i32_72, %172 : i32
    %c12_i32_73 = arith.constant 12 : i32
    %174 = arith.addi %0, %c12_i32_73 : i32
    %175 = arith.index_cast %174 : i32 to index
    %176 = memref.load %arg2[%175] : memref<32xi32, #tpu.memory_space<smem>>
    %177 = arith.index_cast %173 : i32 to index
    %c0_74 = arith.constant 0 : index
    %178 = vector.load %arg3[%177, %c0_74] : memref<512x128xf32, #tpu.memory_space<vmem>>, vector<1x128xf32>
    %179 = arith.index_cast %176 : i32 to index
    %c0_75 = arith.constant 0 : index
    %180 = vector.load %arg4[%179, %c0_75] : memref<16x128xf32, #tpu.memory_space<vmem>>, vector<1x128xf32>
    %181 = arith.addf %178, %180 : vector<1x128xf32>
    %c12 = arith.constant 12 : index
    %c0_76 = arith.constant 0 : index
    %182 = vector.load %arg5[%c12, %c0_76] : memref<32x128xf32, #tpu.memory_space<vmem>>, vector<1x128xf32>
    tpu.vector_store %arg5[%c12, %c0_76], %181 {strides = array<i32>} : memref<32x128xf32, #tpu.memory_space<vmem>>, vector<1x128xf32>,
    %c13_i32 = arith.constant 13 : i32
    %183 = arith.addi %0, %c13_i32 : i32
    %184 = arith.index_cast %183 : i32 to index
    %185 = memref.load %arg1[%184] : memref<32xi32, #tpu.memory_space<smem>>
    %c0_i32_77 = arith.constant 0 : i32
    %c511_i32_78 = arith.constant 511 : i32
    %186 = arith.maxsi %c0_i32_77, %185 : i32
    %187 = arith.minsi %c511_i32_78, %186 : i32
    %c13_i32_79 = arith.constant 13 : i32
    %188 = arith.addi %0, %c13_i32_79 : i32
    %189 = arith.index_cast %188 : i32 to index
    %190 = memref.load %arg2[%189] : memref<32xi32, #tpu.memory_space<smem>>
    %191 = arith.index_cast %187 : i32 to index
    %c0_80 = arith.constant 0 : index
    %192 = vector.load %arg3[%191, %c0_80] : memref<512x128xf32, #tpu.memory_space<vmem>>, vector<1x128xf32>
    %193 = arith.index_cast %190 : i32 to index
    %c0_81 = arith.constant 0 : index
    %194 = vector.load %arg4[%193, %c0_81] : memref<16x128xf32, #tpu.memory_space<vmem>>, vector<1x128xf32>
    %195 = arith.addf %192, %194 : vector<1x128xf32>
    %c13 = arith.constant 13 : index
    %c0_82 = arith.constant 0 : index
    %196 = vector.load %arg5[%c13, %c0_82] : memref<32x128xf32, #tpu.memory_space<vmem>>, vector<1x128xf32>
    tpu.vector_store %arg5[%c13, %c0_82], %195 {strides = array<i32>} : memref<32x128xf32, #tpu.memory_space<vmem>>, vector<1x128xf32>,
    %c14_i32 = arith.constant 14 : i32
    %197 = arith.addi %0, %c14_i32 : i32
    %198 = arith.index_cast %197 : i32 to index
    %199 = memref.load %arg1[%198] : memref<32xi32, #tpu.memory_space<smem>>
    %c0_i32_83 = arith.constant 0 : i32
    %c511_i32_84 = arith.constant 511 : i32
    %200 = arith.maxsi %c0_i32_83, %199 : i32
    %201 = arith.minsi %c511_i32_84, %200 : i32
    %c14_i32_85 = arith.constant 14 : i32
    %202 = arith.addi %0, %c14_i32_85 : i32
    %203 = arith.index_cast %202 : i32 to index
    %204 = memref.load %arg2[%203] : memref<32xi32, #tpu.memory_space<smem>>
    %205 = arith.index_cast %201 : i32 to index
    %c0_86 = arith.constant 0 : index
    %206 = vector.load %arg3[%205, %c0_86] : memref<512x128xf32, #tpu.memory_space<vmem>>, vector<1x128xf32>
    %207 = arith.index_cast %204 : i32 to index
    %c0_87 = arith.constant 0 : index
    %208 = vector.load %arg4[%207, %c0_87] : memref<16x128xf32, #tpu.memory_space<vmem>>, vector<1x128xf32>
    %209 = arith.addf %206, %208 : vector<1x128xf32>
    %c14 = arith.constant 14 : index
    %c0_88 = arith.constant 0 : index
    %210 = vector.load %arg5[%c14, %c0_88] : memref<32x128xf32, #tpu.memory_space<vmem>>, vector<1x128xf32>
    tpu.vector_store %arg5[%c14, %c0_88], %209 {strides = array<i32>} : memref<32x128xf32, #tpu.memory_space<vmem>>, vector<1x128xf32>,
    %c15_i32 = arith.constant 15 : i32
    %211 = arith.addi %0, %c15_i32 : i32
    %212 = arith.index_cast %211 : i32 to index
    %213 = memref.load %arg1[%212] : memref<32xi32, #tpu.memory_space<smem>>
    %c0_i32_89 = arith.constant 0 : i32
    %c511_i32_90 = arith.constant 511 : i32
    %214 = arith.maxsi %c0_i32_89, %213 : i32
    %215 = arith.minsi %c511_i32_90, %214 : i32
    %c15_i32_91 = arith.constant 15 : i32
    %216 = arith.addi %0, %c15_i32_91 : i32
    %217 = arith.index_cast %216 : i32 to index
    %218 = memref.load %arg2[%217] : memref<32xi32, #tpu.memory_space<smem>>
    %219 = arith.index_cast %215 : i32 to index
    %c0_92 = arith.constant 0 : index
    %220 = vector.load %arg3[%219, %c0_92] : memref<512x128xf32, #tpu.memory_space<vmem>>, vector<1x128xf32>
    %221 = arith.index_cast %218 : i32 to index
    %c0_93 = arith.constant 0 : index
    %222 = vector.load %arg4[%221, %c0_93] : memref<16x128xf32, #tpu.memory_space<vmem>>, vector<1x128xf32>
    %223 = arith.addf %220, %222 : vector<1x128xf32>
    %c15 = arith.constant 15 : index
    %c0_94 = arith.constant 0 : index
    %224 = vector.load %arg5[%c15, %c0_94] : memref<32x128xf32, #tpu.memory_space<vmem>>, vector<1x128xf32>
    tpu.vector_store %arg5[%c15, %c0_94], %223 {strides = array<i32>} : memref<32x128xf32, #tpu.memory_space<vmem>>, vector<1x128xf32>,
    %c16_i32 = arith.constant 16 : i32
    %225 = arith.addi %0, %c16_i32 : i32
    %226 = arith.index_cast %225 : i32 to index
    %227 = memref.load %arg1[%226] : memref<32xi32, #tpu.memory_space<smem>>
    %c0_i32_95 = arith.constant 0 : i32
    %c511_i32_96 = arith.constant 511 : i32
    %228 = arith.maxsi %c0_i32_95, %227 : i32
    %229 = arith.minsi %c511_i32_96, %228 : i32
    %c16_i32_97 = arith.constant 16 : i32
    %230 = arith.addi %0, %c16_i32_97 : i32
    %231 = arith.index_cast %230 : i32 to index
    %232 = memref.load %arg2[%231] : memref<32xi32, #tpu.memory_space<smem>>
    %233 = arith.index_cast %229 : i32 to index
    %c0_98 = arith.constant 0 : index
    %234 = vector.load %arg3[%233, %c0_98] : memref<512x128xf32, #tpu.memory_space<vmem>>, vector<1x128xf32>
    %235 = arith.index_cast %232 : i32 to index
    %c0_99 = arith.constant 0 : index
    %236 = vector.load %arg4[%235, %c0_99] : memref<16x128xf32, #tpu.memory_space<vmem>>, vector<1x128xf32>
    %237 = arith.addf %234, %236 : vector<1x128xf32>
    %c16 = arith.constant 16 : index
    %c0_100 = arith.constant 0 : index
    %238 = vector.load %arg5[%c16, %c0_100] : memref<32x128xf32, #tpu.memory_space<vmem>>, vector<1x128xf32>
    tpu.vector_store %arg5[%c16, %c0_100], %237 {strides = array<i32>} : memref<32x128xf32, #tpu.memory_space<vmem>>, vector<1x128xf32>,
    %c17_i32 = arith.constant 17 : i32
    %239 = arith.addi %0, %c17_i32 : i32
    %240 = arith.index_cast %239 : i32 to index
    %241 = memref.load %arg1[%240] : memref<32xi32, #tpu.memory_space<smem>>
    %c0_i32_101 = arith.constant 0 : i32
    %c511_i32_102 = arith.constant 511 : i32
    %242 = arith.maxsi %c0_i32_101, %241 : i32
    %243 = arith.minsi %c511_i32_102, %242 : i32
    %c17_i32_103 = arith.constant 17 : i32
    %244 = arith.addi %0, %c17_i32_103 : i32
    %245 = arith.index_cast %244 : i32 to index
    %246 = memref.load %arg2[%245] : memref<32xi32, #tpu.memory_space<smem>>
    %247 = arith.index_cast %243 : i32 to index
    %c0_104 = arith.constant 0 : index
    %248 = vector.load %arg3[%247, %c0_104] : memref<512x128xf32, #tpu.memory_space<vmem>>, vector<1x128xf32>
    %249 = arith.index_cast %246 : i32 to index
    %c0_105 = arith.constant 0 : index
    %250 = vector.load %arg4[%249, %c0_105] : memref<16x128xf32, #tpu.memory_space<vmem>>, vector<1x128xf32>
    %251 = arith.addf %248, %250 : vector<1x128xf32>
    %c17 = arith.constant 17 : index
    %c0_106 = arith.constant 0 : index
    %252 = vector.load %arg5[%c17, %c0_106] : memref<32x128xf32, #tpu.memory_space<vmem>>, vector<1x128xf32>
    tpu.vector_store %arg5[%c17, %c0_106], %251 {strides = array<i32>} : memref<32x128xf32, #tpu.memory_space<vmem>>, vector<1x128xf32>,
    %c18_i32 = arith.constant 18 : i32
    %253 = arith.addi %0, %c18_i32 : i32
    %254 = arith.index_cast %253 : i32 to index
    %255 = memref.load %arg1[%254] : memref<32xi32, #tpu.memory_space<smem>>
    %c0_i32_107 = arith.constant 0 : i32
    %c511_i32_108 = arith.constant 511 : i32
    %256 = arith.maxsi %c0_i32_107, %255 : i32
    %257 = arith.minsi %c511_i32_108, %256 : i32
    %c18_i32_109 = arith.constant 18 : i32
    %258 = arith.addi %0, %c18_i32_109 : i32
    %259 = arith.index_cast %258 : i32 to index
    %260 = memref.load %arg2[%259] : memref<32xi32, #tpu.memory_space<smem>>
    %261 = arith.index_cast %257 : i32 to index
    %c0_110 = arith.constant 0 : index
    %262 = vector.load %arg3[%261, %c0_110] : memref<512x128xf32, #tpu.memory_space<vmem>>, vector<1x128xf32>
    %263 = arith.index_cast %260 : i32 to index
    %c0_111 = arith.constant 0 : index
    %264 = vector.load %arg4[%263, %c0_111] : memref<16x128xf32, #tpu.memory_space<vmem>>, vector<1x128xf32>
    %265 = arith.addf %262, %264 : vector<1x128xf32>
    %c18 = arith.constant 18 : index
    %c0_112 = arith.constant 0 : index
    %266 = vector.load %arg5[%c18, %c0_112] : memref<32x128xf32, #tpu.memory_space<vmem>>, vector<1x128xf32>
    tpu.vector_store %arg5[%c18, %c0_112], %265 {strides = array<i32>} : memref<32x128xf32, #tpu.memory_space<vmem>>, vector<1x128xf32>,
    %c19_i32 = arith.constant 19 : i32
    %267 = arith.addi %0, %c19_i32 : i32
    %268 = arith.index_cast %267 : i32 to index
    %269 = memref.load %arg1[%268] : memref<32xi32, #tpu.memory_space<smem>>
    %c0_i32_113 = arith.constant 0 : i32
    %c511_i32_114 = arith.constant 511 : i32
    %270 = arith.maxsi %c0_i32_113, %269 : i32
    %271 = arith.minsi %c511_i32_114, %270 : i32
    %c19_i32_115 = arith.constant 19 : i32
    %272 = arith.addi %0, %c19_i32_115 : i32
    %273 = arith.index_cast %272 : i32 to index
    %274 = memref.load %arg2[%273] : memref<32xi32, #tpu.memory_space<smem>>
    %275 = arith.index_cast %271 : i32 to index
    %c0_116 = arith.constant 0 : index
    %276 = vector.load %arg3[%275, %c0_116] : memref<512x128xf32, #tpu.memory_space<vmem>>, vector<1x128xf32>
    %277 = arith.index_cast %274 : i32 to index
    %c0_117 = arith.constant 0 : index
    %278 = vector.load %arg4[%277, %c0_117] : memref<16x128xf32, #tpu.memory_space<vmem>>, vector<1x128xf32>
    %279 = arith.addf %276, %278 : vector<1x128xf32>
    %c19 = arith.constant 19 : index
    %c0_118 = arith.constant 0 : index
    %280 = vector.load %arg5[%c19, %c0_118] : memref<32x128xf32, #tpu.memory_space<vmem>>, vector<1x128xf32>
    tpu.vector_store %arg5[%c19, %c0_118], %279 {strides = array<i32>} : memref<32x128xf32, #tpu.memory_space<vmem>>, vector<1x128xf32>,
    %c20_i32 = arith.constant 20 : i32
    %281 = arith.addi %0, %c20_i32 : i32
    %282 = arith.index_cast %281 : i32 to index
    %283 = memref.load %arg1[%282] : memref<32xi32, #tpu.memory_space<smem>>
    %c0_i32_119 = arith.constant 0 : i32
    %c511_i32_120 = arith.constant 511 : i32
    %284 = arith.maxsi %c0_i32_119, %283 : i32
    %285 = arith.minsi %c511_i32_120, %284 : i32
    %c20_i32_121 = arith.constant 20 : i32
    %286 = arith.addi %0, %c20_i32_121 : i32
    %287 = arith.index_cast %286 : i32 to index
    %288 = memref.load %arg2[%287] : memref<32xi32, #tpu.memory_space<smem>>
    %289 = arith.index_cast %285 : i32 to index
    %c0_122 = arith.constant 0 : index
    %290 = vector.load %arg3[%289, %c0_122] : memref<512x128xf32, #tpu.memory_space<vmem>>, vector<1x128xf32>
    %291 = arith.index_cast %288 : i32 to index
    %c0_123 = arith.constant 0 : index
    %292 = vector.load %arg4[%291, %c0_123] : memref<16x128xf32, #tpu.memory_space<vmem>>, vector<1x128xf32>
    %293 = arith.addf %290, %292 : vector<1x128xf32>
    %c20 = arith.constant 20 : index
    %c0_124 = arith.constant 0 : index
    %294 = vector.load %arg5[%c20, %c0_124] : memref<32x128xf32, #tpu.memory_space<vmem>>, vector<1x128xf32>
    tpu.vector_store %arg5[%c20, %c0_124], %293 {strides = array<i32>} : memref<32x128xf32, #tpu.memory_space<vmem>>, vector<1x128xf32>,
    %c21_i32 = arith.constant 21 : i32
    %295 = arith.addi %0, %c21_i32 : i32
    %296 = arith.index_cast %295 : i32 to index
    %297 = memref.load %arg1[%296] : memref<32xi32, #tpu.memory_space<smem>>
    %c0_i32_125 = arith.constant 0 : i32
    %c511_i32_126 = arith.constant 511 : i32
    %298 = arith.maxsi %c0_i32_125, %297 : i32
    %299 = arith.minsi %c511_i32_126, %298 : i32
    %c21_i32_127 = arith.constant 21 : i32
    %300 = arith.addi %0, %c21_i32_127 : i32
    %301 = arith.index_cast %300 : i32 to index
    %302 = memref.load %arg2[%301] : memref<32xi32, #tpu.memory_space<smem>>
    %303 = arith.index_cast %299 : i32 to index
    %c0_128 = arith.constant 0 : index
    %304 = vector.load %arg3[%303, %c0_128] : memref<512x128xf32, #tpu.memory_space<vmem>>, vector<1x128xf32>
    %305 = arith.index_cast %302 : i32 to index
    %c0_129 = arith.constant 0 : index
    %306 = vector.load %arg4[%305, %c0_129] : memref<16x128xf32, #tpu.memory_space<vmem>>, vector<1x128xf32>
    %307 = arith.addf %304, %306 : vector<1x128xf32>
    %c21 = arith.constant 21 : index
    %c0_130 = arith.constant 0 : index
    %308 = vector.load %arg5[%c21, %c0_130] : memref<32x128xf32, #tpu.memory_space<vmem>>, vector<1x128xf32>
    tpu.vector_store %arg5[%c21, %c0_130], %307 {strides = array<i32>} : memref<32x128xf32, #tpu.memory_space<vmem>>, vector<1x128xf32>,
    %c22_i32 = arith.constant 22 : i32
    %309 = arith.addi %0, %c22_i32 : i32
    %310 = arith.index_cast %309 : i32 to index
    %311 = memref.load %arg1[%310] : memref<32xi32, #tpu.memory_space<smem>>
    %c0_i32_131 = arith.constant 0 : i32
    %c511_i32_132 = arith.constant 511 : i32
    %312 = arith.maxsi %c0_i32_131, %311 : i32
    %313 = arith.minsi %c511_i32_132, %312 : i32
    %c22_i32_133 = arith.constant 22 : i32
    %314 = arith.addi %0, %c22_i32_133 : i32
    %315 = arith.index_cast %314 : i32 to index
    %316 = memref.load %arg2[%315] : memref<32xi32, #tpu.memory_space<smem>>
    %317 = arith.index_cast %313 : i32 to index
    %c0_134 = arith.constant 0 : index
    %318 = vector.load %arg3[%317, %c0_134] : memref<512x128xf32, #tpu.memory_space<vmem>>, vector<1x128xf32>
    %319 = arith.index_cast %316 : i32 to index
    %c0_135 = arith.constant 0 : index
    %320 = vector.load %arg4[%319, %c0_135] : memref<16x128xf32, #tpu.memory_space<vmem>>, vector<1x128xf32>
    %321 = arith.addf %318, %320 : vector<1x128xf32>
    %c22 = arith.constant 22 : index
    %c0_136 = arith.constant 0 : index
    %322 = vector.load %arg5[%c22, %c0_136] : memref<32x128xf32, #tpu.memory_space<vmem>>, vector<1x128xf32>
    tpu.vector_store %arg5[%c22, %c0_136], %321 {strides = array<i32>} : memref<32x128xf32, #tpu.memory_space<vmem>>, vector<1x128xf32>,
    %c23_i32 = arith.constant 23 : i32
    %323 = arith.addi %0, %c23_i32 : i32
    %324 = arith.index_cast %323 : i32 to index
    %325 = memref.load %arg1[%324] : memref<32xi32, #tpu.memory_space<smem>>
    %c0_i32_137 = arith.constant 0 : i32
    %c511_i32_138 = arith.constant 511 : i32
    %326 = arith.maxsi %c0_i32_137, %325 : i32
    %327 = arith.minsi %c511_i32_138, %326 : i32
    %c23_i32_139 = arith.constant 23 : i32
    %328 = arith.addi %0, %c23_i32_139 : i32
    %329 = arith.index_cast %328 : i32 to index
    %330 = memref.load %arg2[%329] : memref<32xi32, #tpu.memory_space<smem>>
    %331 = arith.index_cast %327 : i32 to index
    %c0_140 = arith.constant 0 : index
    %332 = vector.load %arg3[%331, %c0_140] : memref<512x128xf32, #tpu.memory_space<vmem>>, vector<1x128xf32>
    %333 = arith.index_cast %330 : i32 to index
    %c0_141 = arith.constant 0 : index
    %334 = vector.load %arg4[%333, %c0_141] : memref<16x128xf32, #tpu.memory_space<vmem>>, vector<1x128xf32>
    %335 = arith.addf %332, %334 : vector<1x128xf32>
    %c23 = arith.constant 23 : index
    %c0_142 = arith.constant 0 : index
    %336 = vector.load %arg5[%c23, %c0_142] : memref<32x128xf32, #tpu.memory_space<vmem>>, vector<1x128xf32>
    tpu.vector_store %arg5[%c23, %c0_142], %335 {strides = array<i32>} : memref<32x128xf32, #tpu.memory_space<vmem>>, vector<1x128xf32>,
    %c24_i32 = arith.constant 24 : i32
    %337 = arith.addi %0, %c24_i32 : i32
    %338 = arith.index_cast %337 : i32 to index
    %339 = memref.load %arg1[%338] : memref<32xi32, #tpu.memory_space<smem>>
    %c0_i32_143 = arith.constant 0 : i32
    %c511_i32_144 = arith.constant 511 : i32
    %340 = arith.maxsi %c0_i32_143, %339 : i32
    %341 = arith.minsi %c511_i32_144, %340 : i32
    %c24_i32_145 = arith.constant 24 : i32
    %342 = arith.addi %0, %c24_i32_145 : i32
    %343 = arith.index_cast %342 : i32 to index
    %344 = memref.load %arg2[%343] : memref<32xi32, #tpu.memory_space<smem>>
    %345 = arith.index_cast %341 : i32 to index
    %c0_146 = arith.constant 0 : index
    %346 = vector.load %arg3[%345, %c0_146] : memref<512x128xf32, #tpu.memory_space<vmem>>, vector<1x128xf32>
    %347 = arith.index_cast %344 : i32 to index
    %c0_147 = arith.constant 0 : index
    %348 = vector.load %arg4[%347, %c0_147] : memref<16x128xf32, #tpu.memory_space<vmem>>, vector<1x128xf32>
    %349 = arith.addf %346, %348 : vector<1x128xf32>
    %c24 = arith.constant 24 : index
    %c0_148 = arith.constant 0 : index
    %350 = vector.load %arg5[%c24, %c0_148] : memref<32x128xf32, #tpu.memory_space<vmem>>, vector<1x128xf32>
    tpu.vector_store %arg5[%c24, %c0_148], %349 {strides = array<i32>} : memref<32x128xf32, #tpu.memory_space<vmem>>, vector<1x128xf32>,
    %c25_i32 = arith.constant 25 : i32
    %351 = arith.addi %0, %c25_i32 : i32
    %352 = arith.index_cast %351 : i32 to index
    %353 = memref.load %arg1[%352] : memref<32xi32, #tpu.memory_space<smem>>
    %c0_i32_149 = arith.constant 0 : i32
    %c511_i32_150 = arith.constant 511 : i32
    %354 = arith.maxsi %c0_i32_149, %353 : i32
    %355 = arith.minsi %c511_i32_150, %354 : i32
    %c25_i32_151 = arith.constant 25 : i32
    %356 = arith.addi %0, %c25_i32_151 : i32
    %357 = arith.index_cast %356 : i32 to index
    %358 = memref.load %arg2[%357] : memref<32xi32, #tpu.memory_space<smem>>
    %359 = arith.index_cast %355 : i32 to index
    %c0_152 = arith.constant 0 : index
    %360 = vector.load %arg3[%359, %c0_152] : memref<512x128xf32, #tpu.memory_space<vmem>>, vector<1x128xf32>
    %361 = arith.index_cast %358 : i32 to index
    %c0_153 = arith.constant 0 : index
    %362 = vector.load %arg4[%361, %c0_153] : memref<16x128xf32, #tpu.memory_space<vmem>>, vector<1x128xf32>
    %363 = arith.addf %360, %362 : vector<1x128xf32>
    %c25 = arith.constant 25 : index
    %c0_154 = arith.constant 0 : index
    %364 = vector.load %arg5[%c25, %c0_154] : memref<32x128xf32, #tpu.memory_space<vmem>>, vector<1x128xf32>
    tpu.vector_store %arg5[%c25, %c0_154], %363 {strides = array<i32>} : memref<32x128xf32, #tpu.memory_space<vmem>>, vector<1x128xf32>,
    %c26_i32 = arith.constant 26 : i32
    %365 = arith.addi %0, %c26_i32 : i32
    %366 = arith.index_cast %365 : i32 to index
    %367 = memref.load %arg1[%366] : memref<32xi32, #tpu.memory_space<smem>>
    %c0_i32_155 = arith.constant 0 : i32
    %c511_i32_156 = arith.constant 511 : i32
    %368 = arith.maxsi %c0_i32_155, %367 : i32
    %369 = arith.minsi %c511_i32_156, %368 : i32
    %c26_i32_157 = arith.constant 26 : i32
    %370 = arith.addi %0, %c26_i32_157 : i32
    %371 = arith.index_cast %370 : i32 to index
    %372 = memref.load %arg2[%371] : memref<32xi32, #tpu.memory_space<smem>>
    %373 = arith.index_cast %369 : i32 to index
    %c0_158 = arith.constant 0 : index
    %374 = vector.load %arg3[%373, %c0_158] : memref<512x128xf32, #tpu.memory_space<vmem>>, vector<1x128xf32>
    %375 = arith.index_cast %372 : i32 to index
    %c0_159 = arith.constant 0 : index
    %376 = vector.load %arg4[%375, %c0_159] : memref<16x128xf32, #tpu.memory_space<vmem>>, vector<1x128xf32>
    %377 = arith.addf %374, %376 : vector<1x128xf32>
    %c26 = arith.constant 26 : index
    %c0_160 = arith.constant 0 : index
    %378 = vector.load %arg5[%c26, %c0_160] : memref<32x128xf32, #tpu.memory_space<vmem>>, vector<1x128xf32>
    tpu.vector_store %arg5[%c26, %c0_160], %377 {strides = array<i32>} : memref<32x128xf32, #tpu.memory_space<vmem>>, vector<1x128xf32>,
    %c27_i32 = arith.constant 27 : i32
    %379 = arith.addi %0, %c27_i32 : i32
    %380 = arith.index_cast %379 : i32 to index
    %381 = memref.load %arg1[%380] : memref<32xi32, #tpu.memory_space<smem>>
    %c0_i32_161 = arith.constant 0 : i32
    %c511_i32_162 = arith.constant 511 : i32
    %382 = arith.maxsi %c0_i32_161, %381 : i32
    %383 = arith.minsi %c511_i32_162, %382 : i32
    %c27_i32_163 = arith.constant 27 : i32
    %384 = arith.addi %0, %c27_i32_163 : i32
    %385 = arith.index_cast %384 : i32 to index
    %386 = memref.load %arg2[%385] : memref<32xi32, #tpu.memory_space<smem>>
    %387 = arith.index_cast %383 : i32 to index
    %c0_164 = arith.constant 0 : index
    %388 = vector.load %arg3[%387, %c0_164] : memref<512x128xf32, #tpu.memory_space<vmem>>, vector<1x128xf32>
    %389 = arith.index_cast %386 : i32 to index
    %c0_165 = arith.constant 0 : index
    %390 = vector.load %arg4[%389, %c0_165] : memref<16x128xf32, #tpu.memory_space<vmem>>, vector<1x128xf32>
    %391 = arith.addf %388, %390 : vector<1x128xf32>
    %c27 = arith.constant 27 : index
    %c0_166 = arith.constant 0 : index
    %392 = vector.load %arg5[%c27, %c0_166] : memref<32x128xf32, #tpu.memory_space<vmem>>, vector<1x128xf32>
    tpu.vector_store %arg5[%c27, %c0_166], %391 {strides = array<i32>} : memref<32x128xf32, #tpu.memory_space<vmem>>, vector<1x128xf32>,
    %c28_i32 = arith.constant 28 : i32
    %393 = arith.addi %0, %c28_i32 : i32
    %394 = arith.index_cast %393 : i32 to index
    %395 = memref.load %arg1[%394] : memref<32xi32, #tpu.memory_space<smem>>
    %c0_i32_167 = arith.constant 0 : i32
    %c511_i32_168 = arith.constant 511 : i32
    %396 = arith.maxsi %c0_i32_167, %395 : i32
    %397 = arith.minsi %c511_i32_168, %396 : i32
    %c28_i32_169 = arith.constant 28 : i32
    %398 = arith.addi %0, %c28_i32_169 : i32
    %399 = arith.index_cast %398 : i32 to index
    %400 = memref.load %arg2[%399] : memref<32xi32, #tpu.memory_space<smem>>
    %401 = arith.index_cast %397 : i32 to index
    %c0_170 = arith.constant 0 : index
    %402 = vector.load %arg3[%401, %c0_170] : memref<512x128xf32, #tpu.memory_space<vmem>>, vector<1x128xf32>
    %403 = arith.index_cast %400 : i32 to index
    %c0_171 = arith.constant 0 : index
    %404 = vector.load %arg4[%403, %c0_171] : memref<16x128xf32, #tpu.memory_space<vmem>>, vector<1x128xf32>
    %405 = arith.addf %402, %404 : vector<1x128xf32>
    %c28 = arith.constant 28 : index
    %c0_172 = arith.constant 0 : index
    %406 = vector.load %arg5[%c28, %c0_172] : memref<32x128xf32, #tpu.memory_space<vmem>>, vector<1x128xf32>
    tpu.vector_store %arg5[%c28, %c0_172], %405 {strides = array<i32>} : memref<32x128xf32, #tpu.memory_space<vmem>>, vector<1x128xf32>,
    %c29_i32 = arith.constant 29 : i32
    %407 = arith.addi %0, %c29_i32 : i32
    %408 = arith.index_cast %407 : i32 to index
    %409 = memref.load %arg1[%408] : memref<32xi32, #tpu.memory_space<smem>>
    %c0_i32_173 = arith.constant 0 : i32
    %c511_i32_174 = arith.constant 511 : i32
    %410 = arith.maxsi %c0_i32_173, %409 : i32
    %411 = arith.minsi %c511_i32_174, %410 : i32
    %c29_i32_175 = arith.constant 29 : i32
    %412 = arith.addi %0, %c29_i32_175 : i32
    %413 = arith.index_cast %412 : i32 to index
    %414 = memref.load %arg2[%413] : memref<32xi32, #tpu.memory_space<smem>>
    %415 = arith.index_cast %411 : i32 to index
    %c0_176 = arith.constant 0 : index
    %416 = vector.load %arg3[%415, %c0_176] : memref<512x128xf32, #tpu.memory_space<vmem>>, vector<1x128xf32>
    %417 = arith.index_cast %414 : i32 to index
    %c0_177 = arith.constant 0 : index
    %418 = vector.load %arg4[%417, %c0_177] : memref<16x128xf32, #tpu.memory_space<vmem>>, vector<1x128xf32>
    %419 = arith.addf %416, %418 : vector<1x128xf32>
    %c29 = arith.constant 29 : index
    %c0_178 = arith.constant 0 : index
    %420 = vector.load %arg5[%c29, %c0_178] : memref<32x128xf32, #tpu.memory_space<vmem>>, vector<1x128xf32>
    tpu.vector_store %arg5[%c29, %c0_178], %419 {strides = array<i32>} : memref<32x128xf32, #tpu.memory_space<vmem>>, vector<1x128xf32>,
    %c30_i32 = arith.constant 30 : i32
    %421 = arith.addi %0, %c30_i32 : i32
    %422 = arith.index_cast %421 : i32 to index
    %423 = memref.load %arg1[%422] : memref<32xi32, #tpu.memory_space<smem>>
    %c0_i32_179 = arith.constant 0 : i32
    %c511_i32_180 = arith.constant 511 : i32
    %424 = arith.maxsi %c0_i32_179, %423 : i32
    %425 = arith.minsi %c511_i32_180, %424 : i32
    %c30_i32_181 = arith.constant 30 : i32
    %426 = arith.addi %0, %c30_i32_181 : i32
    %427 = arith.index_cast %426 : i32 to index
    %428 = memref.load %arg2[%427] : memref<32xi32, #tpu.memory_space<smem>>
    %429 = arith.index_cast %425 : i32 to index
    %c0_182 = arith.constant 0 : index
    %430 = vector.load %arg3[%429, %c0_182] : memref<512x128xf32, #tpu.memory_space<vmem>>, vector<1x128xf32>
    %431 = arith.index_cast %428 : i32 to index
    %c0_183 = arith.constant 0 : index
    %432 = vector.load %arg4[%431, %c0_183] : memref<16x128xf32, #tpu.memory_space<vmem>>, vector<1x128xf32>
    %433 = arith.addf %430, %432 : vector<1x128xf32>
    %c30 = arith.constant 30 : index
    %c0_184 = arith.constant 0 : index
    %434 = vector.load %arg5[%c30, %c0_184] : memref<32x128xf32, #tpu.memory_space<vmem>>, vector<1x128xf32>
    tpu.vector_store %arg5[%c30, %c0_184], %433 {strides = array<i32>} : memref<32x128xf32, #tpu.memory_space<vmem>>, vector<1x128xf32>,
    %c31_i32 = arith.constant 31 : i32
    %435 = arith.addi %0, %c31_i32 : i32
    %436 = arith.index_cast %435 : i32 to index
    %437 = memref.load %arg1[%436] : memref<32xi32, #tpu.memory_space<smem>>
    %c0_i32_185 = arith.constant 0 : i32
    %c511_i32_186 = arith.constant 511 : i32
    %438 = arith.maxsi %c0_i32_185, %437 : i32
    %439 = arith.minsi %c511_i32_186, %438 : i32
    %c31_i32_187 = arith.constant 31 : i32
    %440 = arith.addi %0, %c31_i32_187 : i32
    %441 = arith.index_cast %440 : i32 to index
    %442 = memref.load %arg2[%441] : memref<32xi32, #tpu.memory_space<smem>>
    %443 = arith.index_cast %439 : i32 to index
    %c0_188 = arith.constant 0 : index
    %444 = vector.load %arg3[%443, %c0_188] : memref<512x128xf32, #tpu.memory_space<vmem>>, vector<1x128xf32>
    %445 = arith.index_cast %442 : i32 to index
    %c0_189 = arith.constant 0 : index
    %446 = vector.load %arg4[%445, %c0_189] : memref<16x128xf32, #tpu.memory_space<vmem>>, vector<1x128xf32>
    %447 = arith.addf %444, %446 : vector<1x128xf32>
    %c31 = arith.constant 31 : index
    %c0_190 = arith.constant 0 : index
    %448 = vector.load %arg5[%c31, %c0_190] : memref<32x128xf32, #tpu.memory_space<vmem>>, vector<1x128xf32>
    tpu.vector_store %arg5[%c31, %c0_190], %447 {strides = array<i32>} : memref<32x128xf32, #tpu.memory_space<vmem>>, vector<1x128xf32>,
    return
  }
  func.func @transform_0(%arg0: i32, %arg1: memref<32xi32, #tpu.memory_space<smem>>, %arg2: memref<32xi32, #tpu.memory_space<smem>>) -> (i32, i32) {
    %c0_i32 = arith.constant 0 : i32
    %c0_i32_0 = arith.constant 0 : i32
    %c0_i32_1 = arith.constant 0 : i32
    return %c0_i32, %c0_i32_0 : i32, i32
  }
  func.func @transform_1(%arg0: i32, %arg1: memref<32xi32, #tpu.memory_space<smem>>, %arg2: memref<32xi32, #tpu.memory_space<smem>>) -> (i32, i32) {
    %c0_i32 = arith.constant 0 : i32
    %c0_i32_0 = arith.constant 0 : i32
    %c0_i32_1 = arith.constant 0 : i32
    return %c0_i32, %c0_i32_0 : i32, i32
  }
  func.func @transform_2(%arg0: i32, %arg1: memref<32xi32, #tpu.memory_space<smem>>, %arg2: memref<32xi32, #tpu.memory_space<smem>>) -> (i32, i32) {
    %c0_i32 = arith.constant 0 : i32
    %c0_i32_0 = arith.constant 0 : i32
    return %arg0, %c0_i32 : i32, i32
  }
}

</mosaic_0001>

<bundles_post_ra>
// kernel: tpu_custom_call.1
= control target key start
LH: loop header
LB: loop body
LE: loop exit
PB: predicated region body
PF: predicated region fallthrough
CT: control target
= control target key end

     0   :  { %s929_s15 = smov [#allocation3]   ;;  %s1084_s0 = inlined_call_operand.hbm [shape: s32[32], index: 0, kind: input, shape index: {}]   ;;  %s1085_s2 = inlined_call_operand.hbm [shape: f32[512,128], index: 2, kind: input, shape index: {}]   ;;  %s1086_s3 = inlined_call_operand.hbm [shape: f32[16,128], index: 3, kind: input, shape index: {}]   ;;  %s1087_s4 = inlined_call_operand.hbm [shape: f32[32,128], index: 4, kind: output, shape index: {}]   ;;  %s1088_s1 = inlined_call_operand.vmem [shape: s32[32], index: 1, kind: input, shape index: {}]  }
   0x1   :  { %10 = dma.hbm_to_smem %s1084_s0, 16, %s929_s15, [#allocation2] }
   0x2   :  { %s11_s20 = sshll.u32 %s1088_s1, 4  ;;  %s12_s20 = int_to_ptr.vmem [resolvable:$true] %s11_s20 }
   0x3   :  { %s849_s21 = scalar_lea.vmem %s12_s20, 16  ;;  %p854_p1 = scmp.lt.s32.totalorder %s12_s20, %s12_s20 }
   0x4   :  { %p850_p0 = scmp.ne.s32.totalorder %s12_s20, %s849_s21  ;;  %p855_p2 = scmp.lt.s32.totalorder %s849_s21, %s849_s21 }
   0x6   :  { %p856_p3 = por %p855_p2, %p854_p1 }
   0x8   :  { %p857_p4 = pnand %p856_p3, %p850_p0 }
   0xa   :  { %860 = shalt.err (!%p857_p4)  }
   0xb   :  { %s930_s22 = smov [#allocation4]  }
   0xc   :  { %14 = dma.vmem_to_smem %s12_s20, 16, %s930_s22, [#allocation2] }
   0xd   :  { %921 = dma.done.wait [#allocation2], 32 }
   0xe   :  { %922 = vsyncadd [#allocation2], 4294967264 }
   0xf   :  { %16 = sfence }
  0x10   :  { %17 = vsyncpa [#allocation6], 0 }
  0x11   :  { %18 = vsyncpa [#allocation9], 0 }
  0x12   :  { %19 = vsyncpa [#allocation7], 0  ;;  %s931_s0 = smov [#allocation5]  }
  0x13   :  { %s25_s23 = sshll.u32 %s931_s0, 4  ;;  %s26_s23 = int_to_ptr.vmem [resolvable:$true] %s25_s23 }
  0x14   :  { %s869_s1 = scalar_lea.vmem %s26_s23, 8192  ;;  %p874_p6 = scmp.lt.s32.totalorder %s26_s23, %s26_s23 }
  0x15   :  { %p870_p5 = scmp.ne.s32.totalorder %s26_s23, %s869_s1  ;;  %p875_p7 = scmp.lt.s32.totalorder %s869_s1, %s869_s1 }
  0x17   :  { %p876_p8 = por %p875_p7, %p874_p6 }
  0x19   :  { %p877_p9 = pnand %p876_p8, %p870_p5 }
  0x1b   :  { %880 = shalt.err (!%p877_p9)
}
  0x1c   :  { %s932_s24 = smov 128   ;;  %s933_s25 = smov 8  }
  0x1d   :  { %31 = dma.hbm_to_vmem [thread:$0]  %s1085_s2, 8192, %s26_s23, [#allocation6], %s932_s24, %s932_s24, %s933_s25  }
  0x1e   :  { %s934_s28 = smov [#allocation8]  }
  0x1f   :  { %s37_s29 = sshll.u32 %s934_s28, 4  ;;  %s38_s29 = int_to_ptr.vmem [resolvable:$true] %s37_s29 }
  0x20   :  { %s889_s30 = scalar_lea.vmem %s38_s29, 256  ;;  %p894_p11 = scmp.lt.s32.totalorder %s38_s29, %s38_s29 }
  0x21   :  { %p890_p10 = scmp.ne.s32.totalorder %s38_s29, %s889_s30  ;;  %p895_p12 = scmp.lt.s32.totalorder %s889_s30, %s889_s30 }
  0x23   :  { %p896_p13 = por %p895_p12, %p894_p11 }
  0x25   :  { %p897_p0 = pnand %p896_p13, %p890_p10 }
  0x27   :  { %900 = shalt.err (!%p897_p0)
}
  0x28   :  { %43 = dma.hbm_to_vmem [thread:$0]  %s1086_s3, 256, %s38_s29, [#allocation9], %s932_s24, %s932_s24, %s933_s25  }
  0x29   :  { %923 = dma.done.wait [#allocation6], 8192  }
  0x2a   :  { %924 = vsyncadd [#allocation6], 4294959104 }
  0x2b   :  { %925 = dma.done.wait [#allocation9], 256  }
  0x2c   :  { %926 = vsyncadd [#allocation9], 4294967040  ;;  %s51_s2 = sld [smem:[#allocation3]] }
  0x2d   :  { %s56_s7 = sld [smem:[#allocation4]] }
  0x2e   :  { %s553_s8 = sld [smem:[#allocation3 + $0x1]] }
  0x2f   :  { %s559_s9 = sld [smem:[#allocation4 + $0x1]] }
  0x30   :  { %s560_s10 = sld [smem:[#allocation3 + $0x2]] }
  0x31   :  { %s979_s11 = sld [smem:[#allocation4 + $0x2]] }
  0x32   :  { %p52_p1 = scmp.gt.s32.totalorder %s51_s2, 0  ;;  %p548_p2 = scmp.lt.s32.totalorder %s51_s2, 511 }
  0x33   :  { %s981_s12 = sld [smem:[#allocation3 + $0x3]]  ;;  %s59_s3 = scalar_lea.vmem [#allocation8], %s56_s7 }
  0x34   :  { %s1090_s2 = smov (!%p52_p1, %s51_s2), 0  ;;  %p65_p3 = scmp.gt.s32.totalorder %s553_s8, 0  ;;  %v60_v0 = vld [vmem:[%s59_s3] sm:$0x1] }
  0x35   :  { %p554_p4 = scmp.lt.s32.totalorder %s553_s8, 511  ;;  %s1092_s2 = smov (!%p548_p2, %s1090_s2), 511 }
  0x36   :  { %s1094_s8 = smov (!%p65_p3, %s553_s8), 0  ;;  %s57_s13 = scalar_lea.vmem [#allocation5], %s1092_s2 }
  0x37   :  { %v58_v1 = vld [vmem:[%s57_s13] sm:$0x1]  ;;  %s1096_s8 = smov (!%p554_p4, %s1094_s8), 511  ;;  %s72_s14 = scalar_lea.vmem [#allocation8], %s559_s9 }
  0x38   :  { %v61_v2 = vadd.f32 %v60_v0, %v58_v1  ;;  %v73_v3 = vld [vmem:[%s72_s14] sm:$0x1]  ;;  %p78_p5 = scmp.gt.s32.totalorder %s560_s10, 0  ;;  %p561_p6 = scmp.lt.s32.totalorder %s560_s10, 511 }
  0x39   :  { %s70_s15 = scalar_lea.vmem [#allocation5], %s1096_s8  ;;  %p91_p7 = scmp.gt.s32.totalorder %s981_s12, 0 }
  0x3a   :  { %62 = vst [vmem:[#allocation10] sm:$0x1] %v61_v2  ;;  %v71_v4 = vld [vmem:[%s70_s15] sm:$0x1]  ;;  %s1098_s10 = smov (!%p78_p5, %s560_s10), 0  ;;  %p568_p8 = scmp.lt.s32.totalorder %s981_s12, 511 }
  0x3b   :  { %v74_v5 = vadd.f32 %v73_v3, %v71_v4  ;;  %s1100_s10 = smov (!%p561_p6, %s1098_s10), 511  ;;  %s85_s16 = scalar_lea.vmem [#allocation8], %s979_s11 }
  0x3c   :  { %v86_v6 = vld [vmem:[%s85_s16] sm:$0x1]  ;;  %s1102_s12 = smov (!%p91_p7, %s981_s12), 0  ;;  %s573_s17 = sld [smem:[#allocation4 + $0x3]] }
  0x3d   :  { %75 = vst [vmem:[#allocation10 + $0x1] sm:$0x1] %v74_v5  ;;  %s83_s18 = scalar_lea.vmem [#allocation5], %s1100_s10  ;;  %s1104_s12 = smov (!%p568_p8, %s1102_s12), 511 }
  0x3e   :  { %v84_v7 = vld [vmem:[%s83_s18] sm:$0x1]  ;;  %s574_s19 = sld [smem:[#allocation3 + $0x4]]  ;;  %s96_s22 = scalar_lea.vmem [#allocation5], %s1104_s12 }
  0x3f   :  { %v87_v8 = vadd.f32 %v86_v6, %v84_v7  ;;  %s580_s20 = sld [smem:[#allocation4 + $0x4]]  ;;  %v97_v9 = vld [vmem:[%s96_s22] sm:$0x1] }
  0x40   :  { %s581_s21 = sld [smem:[#allocation3 + $0x5]] }
  0x41   :  { %88 = vst [vmem:[#allocation10 + $0x2] sm:$0x1] %v87_v8  ;;  %s587_s0 = sld [smem:[#allocation4 + $0x5]] }
  0x42   :  { %s987_s23 = sld [smem:[#allocation3 + $0x6]]  ;;  %s98_s1 = scalar_lea.vmem [#allocation8], %s573_s17 }
  0x43   :  { %v99_v10 = vld [vmem:[%s98_s1] sm:$0x1]  ;;  %s989_s26 = sld [smem:[#allocation4 + $0x6]] }
  0x44   :  { %v100_v11 = vadd.f32 %v99_v10, %v97_v9  ;;  %p104_p9 = scmp.gt.s32.totalorder %s574_s19, 0  ;;  %p575_p10 = scmp.lt.s32.totalorder %s574_s19, 511 }
  0x45   :  { %s991_s27 = sld [smem:[#allocation3 + $0x7]]  ;;  %s111_s28 = scalar_lea.vmem [#allocation8], %s580_s20 }
  0x46   :  { %101 = vst [vmem:[#allocation10 + $0x3] sm:$0x1] %v100_v11  ;;  %s1106_s19 = smov (!%p104_p9, %s574_s19), 0  ;;  %p117_p11 = scmp.gt.s32.totalorder %s581_s21, 0  ;;  %v112_v12 = vld [vmem:[%s111_s28] sm:$0x1] }
  0x47   :  { %p582_p12 = scmp.lt.s32.totalorder %s581_s21, 511  ;;  %s1108_s19 = smov (!%p575_p10, %s1106_s19), 511 }
  0x48   :  { %s1110_s21 = smov (!%p117_p11, %s581_s21), 0  ;;  %s109_s29 = scalar_lea.vmem [#allocation5], %s1108_s19 }
  0x49   :  { %v110_v13 = vld [vmem:[%s109_s29] sm:$0x1]  ;;  %s1112_s21 = smov (!%p582_p12, %s1110_s21), 511  ;;  %s124_s30 = scalar_lea.vmem [#allocation8], %s587_s0 }
  0x4a   :  { %v113_v14 = vadd.f32 %v112_v12, %v110_v13  ;;  %v125_v15 = vld [vmem:[%s124_s30] sm:$0x1]  ;;  %p130_p13 = scmp.gt.s32.totalorder %s987_s23, 0  ;;  %p589_p0 = scmp.lt.s32.totalorder %s987_s23, 511 }
  0x4b   :  { %s122_s5 = scalar_lea.vmem [#allocation5], %s1112_s21  ;;  %p143_p1 = scmp.gt.s32.totalorder %s991_s27, 0 }
  0x4c   :  { %114 = vst [vmem:[#allocation10 + $0x4] sm:$0x1] %v113_v14  ;;  %v123_v16 = vld [vmem:[%s122_s5] sm:$0x1]  ;;  %s1114_s23 = smov (!%p130_p13, %s987_s23), 0  ;;  %p596_p2 = scmp.lt.s32.totalorder %s991_s27, 511 }
  0x4d   :  { %v126_v17 = vadd.f32 %v125_v15, %v123_v16  ;;  %s1116_s23 = smov (!%p589_p0, %s1114_s23), 511  ;;  %s137_s6 = scalar_lea.vmem [#allocation8], %s989_s26 }
  0x4e   :  { %v138_v18 = vld [vmem:[%s137_s6] sm:$0x1]  ;;  %s1118_s27 = smov (!%p143_p1, %s991_s27), 0  ;;  %s601_s2 = sld [smem:[#allocation4 + $0x7]] }
  0x4f   :  { %127 = vst [vmem:[#allocation10 + $0x5] sm:$0x1] %v126_v17  ;;  %s135_s7 = scalar_lea.vmem [#allocation5], %s1116_s23  ;;  %s1120_s27 = smov (!%p596_p2, %s1118_s27), 511 }
  0x50   :  { %v136_v19 = vld [vmem:[%s135_s7] sm:$0x1]  ;;  %s602_s8 = sld [smem:[#allocation3 + $0x8]]  ;;  %s148_s11 = scalar_lea.vmem [#allocation5], %s1120_s27 }
  0x51   :  { %v139_v20 = vadd.f32 %v138_v18, %v136_v19  ;;  %s608_s9 = sld [smem:[#allocation4 + $0x8]]  ;;  %v149_v21 = vld [vmem:[%s148_s11] sm:$0x1] }
  0x52   :  { %s609_s10 = sld [smem:[#allocation3 + $0x9]] }
  0x53   :  { %140 = vst [vmem:[#allocation10 + $0x6] sm:$0x1] %v139_v20  ;;  %s615_s12 = sld [smem:[#allocation4 + $0x9]] }
  0x54   :  { %s1000_s3 = sld [smem:[#allocation3 + $0xa]]  ;;  %s150_s13 = scalar_lea.vmem [#allocation8], %s601_s2 }
  0x55   :  { %v151_v22 = vld [vmem:[%s150_s13] sm:$0x1]  ;;  %s1002_s14 = sld [smem:[#allocation4 + $0xa]] }
  0x56   :  { %v152_v23 = vadd.f32 %v151_v22, %v149_v21  ;;  %p156_p3 = scmp.gt.s32.totalorder %s602_s8, 0  ;;  %p603_p4 = scmp.lt.s32.totalorder %s602_s8, 511 }
  0x57   :  { %s1004_s15 = sld [smem:[#allocation3 + $0xb]]  ;;  %s163_s16 = scalar_lea.vmem [#allocation8], %s608_s9 }
  0x58   :  { %153 = vst [vmem:[#allocation10 + $0x7] sm:$0x1] %v152_v23  ;;  %s1122_s8 = smov (!%p156_p3, %s602_s8), 0  ;;  %p169_p5 = scmp.gt.s32.totalorder %s609_s10, 0  ;;  %v164_v24 = vld [vmem:[%s163_s16] sm:$0x1] }
  0x59   :  { %p610_p6 = scmp.lt.s32.totalorder %s609_s10, 511  ;;  %s1124_s8 = smov (!%p603_p4, %s1122_s8), 511 }
  0x5a   :  { %s1126_s10 = smov (!%p169_p5, %s609_s10), 0  ;;  %s161_s17 = scalar_lea.vmem [#allocation5], %s1124_s8 }
  0x5b   :  { %v162_v25 = vld [vmem:[%s161_s17] sm:$0x1]  ;;  %s1128_s10 = smov (!%p610_p6, %s1126_s10), 511  ;;  %s176_s18 = scalar_lea.vmem [#allocation8], %s615_s12 }
  0x5c   :  { %v165_v26 = vadd.f32 %v164_v24, %v162_v25  ;;  %v177_v27 = vld [vmem:[%s176_s18] sm:$0x1]  ;;  %p182_p7 = scmp.gt.s32.totalorder %s1000_s3, 0  ;;  %p617_p8 = scmp.lt.s32.totalorder %s1000_s3, 511 }
  0x5d   :  { %s174_s19 = scalar_lea.vmem [#allocation5], %s1128_s10  ;;  %p195_p9 = scmp.gt.s32.totalorder %s1004_s15, 0 }
  0x5e   :  { %166 = vst [vmem:[#allocation10 + $0x8] sm:$0x1] %v165_v26  ;;  %v175_v28 = vld [vmem:[%s174_s19] sm:$0x1]  ;;  %s1130_s3 = smov (!%p182_p7, %s1000_s3), 0  ;;  %p624_p10 = scmp.lt.s32.totalorder %s1004_s15, 511 }
  0x5f   :  { %v178_v29 = vadd.f32 %v177_v27, %v175_v28  ;;  %s1132_s3 = smov (!%p617_p8, %s1130_s3), 511  ;;  %s189_s20 = scalar_lea.vmem [#allocation8], %s1002_s14 }
  0x60   :  { %v190_v30 = vld [vmem:[%s189_s20] sm:$0x1]  ;;  %s1134_s15 = smov (!%p195_p9, %s1004_s15), 0  ;;  %s629_s21 = sld [smem:[#allocation4 + $0xb]] }
  0x61   :  { %179 = vst [vmem:[#allocation10 + $0x9] sm:$0x1] %v178_v29  ;;  %s187_s22 = scalar_lea.vmem [#allocation5], %s1132_s3  ;;  %s1136_s15 = smov (!%p624_p10, %s1134_s15), 511 }
  0x62   :  { %v188_v31 = vld [vmem:[%s187_s22] sm:$0x1]  ;;  %s630_s0 = sld [smem:[#allocation3 + $0xc]]  ;;  %s200_s26 = scalar_lea.vmem [#allocation5], %s1136_s15 }
  0x63   :  { %v191_v32 = vadd.f32 %v190_v30, %v188_v31  ;;  %s636_s23 = sld [smem:[#allocation4 + $0xc]]  ;;  %v201_v33 = vld [vmem:[%s200_s26] sm:$0x1] }
  0x64   :  { %s637_s1 = sld [smem:[#allocation3 + $0xd]] }
  0x65   :  { %192 = vst [vmem:[#allocation10 + $0xa] sm:$0x1] %v191_v32  ;;  %s643_s27 = sld [smem:[#allocation4 + $0xd]] }
  0x66   :  { %s1013_s28 = sld [smem:[#allocation3 + $0xe]]  ;;  %s202_s29 = scalar_lea.vmem [#allocation8], %s629_s21 }
  0x67   :  { %v203_v34 = vld [vmem:[%s202_s29] sm:$0x1]  ;;  %s1015_s30 = sld [smem:[#allocation4 + $0xe]] }
  0x68   :  { %v204_v35 = vadd.f32 %v203_v34, %v201_v33  ;;  %p208_p11 = scmp.gt.s32.totalorder %s630_s0, 0  ;;  %p631_p12 = scmp.lt.s32.totalorder %s630_s0, 511 }
  0x69   :  { %s1017_s5 = sld [smem:[#allocation3 + $0xf]]  ;;  %s215_s6 = scalar_lea.vmem [#allocation8], %s636_s23 }
  0x6a   :  { %205 = vst [vmem:[#allocation10 + $0xb] sm:$0x1] %v204_v35  ;;  %s1138_s0 = smov (!%p208_p11, %s630_s0), 0  ;;  %p221_p13 = scmp.gt.s32.totalorder %s637_s1, 0  ;;  %v216_v36 = vld [vmem:[%s215_s6] sm:$0x1] }
  0x6b   :  { %p638_p0 = scmp.lt.s32.totalorder %s637_s1, 511  ;;  %s1140_s0 = smov (!%p631_p12, %s1138_s0), 511 }
  0x6c   :  { %s1142_s1 = smov (!%p221_p13, %s637_s1), 0  ;;  %s213_s2 = scalar_lea.vmem [#allocation5], %s1140_s0 }
  0x6d   :  { %v214_v37 = vld [vmem:[%s213_s2] sm:$0x1]  ;;  %s1144_s1 = smov (!%p638_p0, %s1142_s1), 511  ;;  %s228_s7 = scalar_lea.vmem [#allocation8], %s643_s27 }
  0x6e   :  { %v217_v38 = vadd.f32 %v216_v36, %v214_v37  ;;  %v229_v39 = vld [vmem:[%s228_s7] sm:$0x1]  ;;  %p234_p1 = scmp.gt.s32.totalorder %s1013_s28, 0  ;;  %p645_p2 = scmp.lt.s32.totalorder %s1013_s28, 511 }
  0x6f   :  { %s226_s8 = scalar_lea.vmem [#allocation5], %s1144_s1  ;;  %p247_p3 = scmp.gt.s32.totalorder %s1017_s5, 0 }
  0x70   :  { %218 = vst [vmem:[#allocation10 + $0xc] sm:$0x1] %v217_v38  ;;  %v227_v40 = vld [vmem:[%s226_s8] sm:$0x1]  ;;  %s1146_s28 = smov (!%p234_p1, %s1013_s28), 0  ;;  %p652_p4 = scmp.lt.s32.totalorder %s1017_s5, 511 }
  0x71   :  { %v230_v41 = vadd.f32 %v229_v39, %v227_v40  ;;  %s1148_s28 = smov (!%p645_p2, %s1146_s28), 511  ;;  %s241_s9 = scalar_lea.vmem [#allocation8], %s1015_s30 }
  0x72   :  { %v242_v42 = vld [vmem:[%s241_s9] sm:$0x1]  ;;  %s1150_s5 = smov (!%p247_p3, %s1017_s5), 0  ;;  %s657_s10 = sld [smem:[#allocation4 + $0xf]] }
  0x73   :  { %231 = vst [vmem:[#allocation10 + $0xd] sm:$0x1] %v230_v41  ;;  %s239_s11 = scalar_lea.vmem [#allocation5], %s1148_s28  ;;  %s1152_s5 = smov (!%p652_p4, %s1150_s5), 511 }
  0x74   :  { %v240_v43 = vld [vmem:[%s239_s11] sm:$0x1]  ;;  %s658_s12 = sld [smem:[#allocation3 + $0x10]]  ;;  %s252_s14 = scalar_lea.vmem [#allocation5], %s1152_s5 }
  0x75   :  { %v243_v44 = vadd.f32 %v242_v42, %v240_v43  ;;  %s664_s3 = sld [smem:[#allocation4 + $0x10]]  ;;  %v253_v45 = vld [vmem:[%s252_s14] sm:$0x1] }
  0x76   :  { %s665_s13 = sld [smem:[#allocation3 + $0x11]] }
  0x77   :  { %244 = vst [vmem:[#allocation10 + $0xe] sm:$0x1] %v243_v44  ;;  %s671_s15 = sld [smem:[#allocation4 + $0x11]] }
  0x78   :  { %s1026_s16 = sld [smem:[#allocation3 + $0x12]]  ;;  %s254_s17 = scalar_lea.vmem [#allocation8], %s657_s10 }
  0x79   :  { %v255_v46 = vld [vmem:[%s254_s17] sm:$0x1]  ;;  %s1028_s18 = sld [smem:[#allocation4 + $0x12]] }
  0x7a   :  { %v256_v47 = vadd.f32 %v255_v46, %v253_v45  ;;  %p260_p5 = scmp.gt.s32.totalorder %s658_s12, 0  ;;  %p659_p6 = scmp.lt.s32.totalorder %s658_s12, 511 }
  0x7b   :  { %s1030_s19 = sld [smem:[#allocation3 + $0x13]]  ;;  %s267_s20 = scalar_lea.vmem [#allocation8], %s664_s3 }
  0x7c   :  { %257 = vst [vmem:[#allocation10 + $0xf] sm:$0x1] %v256_v47  ;;  %s1154_s12 = smov (!%p260_p5, %s658_s12), 0  ;;  %p273_p7 = scmp.gt.s32.totalorder %s665_s13, 0  ;;  %v268_v48 = vld [vmem:[%s267_s20] sm:$0x1] }
  0x7d   :  { %p666_p8 = scmp.lt.s32.totalorder %s665_s13, 511  ;;  %s1156_s12 = smov (!%p659_p6, %s1154_s12), 511 }
  0x7e   :  { %s1158_s13 = smov (!%p273_p7, %s665_s13), 0  ;;  %s265_s21 = scalar_lea.vmem [#allocation5], %s1156_s12 }
  0x7f   :  { %v266_v49 = vld [vmem:[%s265_s21] sm:$0x1]  ;;  %s1160_s13 = smov (!%p666_p8, %s1158_s13), 511  ;;  %s280_s22 = scalar_lea.vmem [#allocation8], %s671_s15 }
  0x80   :  { %v269_v50 = vadd.f32 %v268_v48, %v266_v49  ;;  %v281_v51 = vld [vmem:[%s280_s22] sm:$0x1]  ;;  %p286_p9 = scmp.gt.s32.totalorder %s1026_s16, 0  ;;  %p673_p10 = scmp.lt.s32.totalorder %s1026_s16, 511 }
  0x81   :  { %s278_s0 = scalar_lea.vmem [#allocation5], %s1160_s13  ;;  %p299_p11 = scmp.gt.s32.totalorder %s1030_s19, 0 }
  0x82   :  { %270 = vst [vmem:[#allocation10 + $0x10] sm:$0x1] %v269_v50  ;;  %v279_v52 = vld [vmem:[%s278_s0] sm:$0x1]  ;;  %s1162_s16 = smov (!%p286_p9, %s1026_s16), 0  ;;  %p680_p12 = scmp.lt.s32.totalorder %s1030_s19, 511 }
  0x83   :  { %v282_v53 = vadd.f32 %v281_v51, %v279_v52  ;;  %s1164_s16 = smov (!%p673_p10, %s1162_s16), 511  ;;  %s293_s23 = scalar_lea.vmem [#allocation8], %s1028_s18 }
  0x84   :  { %v294_v54 = vld [vmem:[%s293_s23] sm:$0x1]  ;;  %s1166_s19 = smov (!%p299_p11, %s1030_s19), 0  ;;  %s685_s1 = sld [smem:[#allocation4 + $0x13]] }
  0x85   :  { %283 = vst [vmem:[#allocation10 + $0x11] sm:$0x1] %v282_v53  ;;  %s291_s26 = scalar_lea.vmem [#allocation5], %s1164_s16  ;;  %s1168_s19 = smov (!%p680_p12, %s1166_s19), 511 }
  0x86   :  { %v292_v55 = vld [vmem:[%s291_s26] sm:$0x1]  ;;  %s686_s27 = sld [smem:[#allocation3 + $0x14]]  ;;  %s304_s30 = scalar_lea.vmem [#allocation5], %s1168_s19 }
  0x87   :  { %v295_v56 = vadd.f32 %v294_v54, %v292_v55  ;;  %s692_s28 = sld [smem:[#allocation4 + $0x14]]  ;;  %v305_v57 = vld [vmem:[%s304_s30] sm:$0x1] }
  0x88   :  { %s693_s29 = sld [smem:[#allocation3 + $0x15]] }
  0x89   :  { %296 = vst [vmem:[#allocation10 + $0x12] sm:$0x1] %v295_v56  ;;  %s699_s5 = sld [smem:[#allocation4 + $0x15]] }
  0x8a   :  { %s1039_s6 = sld [smem:[#allocation3 + $0x16]]  ;;  %s306_s2 = scalar_lea.vmem [#allocation8], %s685_s1 }
  0x8b   :  { %v307_v58 = vld [vmem:[%s306_s2] sm:$0x1]  ;;  %s1041_s7 = sld [smem:[#allocation4 + $0x16]] }
  0x8c   :  { %v308_v59 = vadd.f32 %v307_v58, %v305_v57  ;;  %p312_p13 = scmp.gt.s32.totalorder %s686_s27, 0  ;;  %p687_p0 = scmp.lt.s32.totalorder %s686_s27, 511 }
  0x8d   :  { %s1043_s8 = sld [smem:[#allocation3 + $0x17]]  ;;  %s319_s9 = scalar_lea.vmem [#allocation8], %s692_s28 }
  0x8e   :  { %309 = vst [vmem:[#allocation10 + $0x13] sm:$0x1] %v308_v59  ;;  %s1170_s27 = smov (!%p312_p13, %s686_s27), 0  ;;  %p325_p1 = scmp.gt.s32.totalorder %s693_s29, 0  ;;  %v320_v60 = vld [vmem:[%s319_s9] sm:$0x1] }
  0x8f   :  { %p694_p2 = scmp.lt.s32.totalorder %s693_s29, 511  ;;  %s1172_s27 = smov (!%p687_p0, %s1170_s27), 511 }
  0x90   :  { %s1174_s29 = smov (!%p325_p1, %s693_s29), 0  ;;  %s317_s10 = scalar_lea.vmem [#allocation5], %s1172_s27 }
  0x91   :  { %v318_v61 = vld [vmem:[%s317_s10] sm:$0x1]  ;;  %s1176_s29 = smov (!%p694_p2, %s1174_s29), 511  ;;  %s332_s11 = scalar_lea.vmem [#allocation8], %s699_s5 }
  0x92   :  { %v321_v62 = vadd.f32 %v320_v60, %v318_v61  ;;  %v333_v63 = vld [vmem:[%s332_s11] sm:$0x1]  ;;  %p338_p3 = scmp.gt.s32.totalorder %s1039_s6, 0  ;;  %p701_p4 = scmp.lt.s32.totalorder %s1039_s6, 511 }
  0x93   :  { %s330_s12 = scalar_lea.vmem [#allocation5], %s1176_s29  ;;  %p351_p5 = scmp.gt.s32.totalorder %s1043_s8, 0 }
  0x94   :  { %322 = vst [vmem:[#allocation10 + $0x14] sm:$0x1] %v321_v62  ;;  %v331_v0 = vld [vmem:[%s330_s12] sm:$0x1]  ;;  %s1178_s6 = smov (!%p338_p3, %s1039_s6), 0  ;;  %p708_p6 = scmp.lt.s32.totalorder %s1043_s8, 511 }
  0x95   :  { %v334_v1 = vadd.f32 %v333_v63, %v331_v0  ;;  %s1180_s6 = smov (!%p701_p4, %s1178_s6), 511  ;;  %s345_s3 = scalar_lea.vmem [#allocation8], %s1041_s7 }
  0x96   :  { %v346_v2 = vld [vmem:[%s345_s3] sm:$0x1]  ;;  %s1182_s8 = smov (!%p351_p5, %s1043_s8), 0  ;;  %s713_s13 = sld [smem:[#allocation4 + $0x17]] }
  0x97   :  { %335 = vst [vmem:[#allocation10 + $0x15] sm:$0x1] %v334_v1  ;;  %s343_s14 = scalar_lea.vmem [#allocation5], %s1180_s6  ;;  %s1184_s8 = smov (!%p708_p6, %s1182_s8), 511 }
  0x98   :  { %v344_v3 = vld [vmem:[%s343_s14] sm:$0x1]  ;;  %s714_s15 = sld [smem:[#allocation3 + $0x18]]  ;;  %s356_s18 = scalar_lea.vmem [#allocation5], %s1184_s8 }
  0x99   :  { %v347_v4 = vadd.f32 %v346_v2, %v344_v3  ;;  %s720_s16 = sld [smem:[#allocation4 + $0x18]]  ;;  %v357_v5 = vld [vmem:[%s356_s18] sm:$0x1] }
  0x9a   :  { %s721_s17 = sld [smem:[#allocation3 + $0x19]] }
  0x9b   :  { %348 = vst [vmem:[#allocation10 + $0x16] sm:$0x1] %v347_v4  ;;  %s727_s19 = sld [smem:[#allocation4 + $0x19]] }
  0x9c   :  { %s1052_s20 = sld [smem:[#allocation3 + $0x1a]]  ;;  %s358_s21 = scalar_lea.vmem [#allocation8], %s713_s13 }
  0x9d   :  { %v359_v6 = vld [vmem:[%s358_s21] sm:$0x1]  ;;  %s1054_s22 = sld [smem:[#allocation4 + $0x1a]] }
  0x9e   :  { %v360_v7 = vadd.f32 %v359_v6, %v357_v5  ;;  %p364_p7 = scmp.gt.s32.totalorder %s714_s15, 0  ;;  %p715_p8 = scmp.lt.s32.totalorder %s714_s15, 511 }
  0x9f   :  { %s1056_s0 = sld [smem:[#allocation3 + $0x1b]]  ;;  %s371_s23 = scalar_lea.vmem [#allocation8], %s720_s16 }
  0xa0   :  { %361 = vst [vmem:[#allocation10 + $0x17] sm:$0x1] %v360_v7  ;;  %s1186_s15 = smov (!%p364_p7, %s714_s15), 0  ;;  %p377_p9 = scmp.gt.s32.totalorder %s721_s17, 0  ;;  %v372_v8 = vld [vmem:[%s371_s23] sm:$0x1] }
  0xa1   :  { %p722_p10 = scmp.lt.s32.totalorder %s721_s17, 511  ;;  %s1188_s15 = smov (!%p715_p8, %s1186_s15), 511 }
  0xa2   :  { %s1190_s17 = smov (!%p377_p9, %s721_s17), 0  ;;  %s369_s1 = scalar_lea.vmem [#allocation5], %s1188_s15 }
  0xa3   :  { %v370_v9 = vld [vmem:[%s369_s1] sm:$0x1]  ;;  %s1192_s17 = smov (!%p722_p10, %s1190_s17), 511  ;;  %s384_s26 = scalar_lea.vmem [#allocation8], %s727_s19 }
  0xa4   :  { %v373_v10 = vadd.f32 %v372_v8, %v370_v9  ;;  %v385_v11 = vld [vmem:[%s384_s26] sm:$0x1]  ;;  %p390_p11 = scmp.gt.s32.totalorder %s1052_s20, 0  ;;  %p729_p12 = scmp.lt.s32.totalorder %s1052_s20, 511 }
  0xa5   :  { %s382_s27 = scalar_lea.vmem [#allocation5], %s1192_s17  ;;  %p403_p13 = scmp.gt.s32.totalorder %s1056_s0, 0 }
  0xa6   :  { %374 = vst [vmem:[#allocation10 + $0x18] sm:$0x1] %v373_v10  ;;  %v383_v12 = vld [vmem:[%s382_s27] sm:$0x1]  ;;  %s1194_s20 = smov (!%p390_p11, %s1052_s20), 0  ;;  %p736_p0 = scmp.lt.s32.totalorder %s1056_s0, 511 }
  0xa7   :  { %v386_v13 = vadd.f32 %v385_v11, %v383_v12  ;;  %s1196_s20 = smov (!%p729_p12, %s1194_s20), 511  ;;  %s397_s28 = scalar_lea.vmem [#allocation8], %s1054_s22 }
  0xa8   :  { %v398_v14 = vld [vmem:[%s397_s28] sm:$0x1]  ;;  %s1198_s0 = smov (!%p403_p13, %s1056_s0), 0  ;;  %s741_s29 = sld [smem:[#allocation4 + $0x1b]] }
  0xa9   :  { %387 = vst [vmem:[#allocation10 + $0x19] sm:$0x1] %v386_v13  ;;  %s395_s30 = scalar_lea.vmem [#allocation5], %s1196_s20  ;;  %s1200_s0 = smov (!%p736_p0, %s1198_s0), 511 }
  0xaa   :  { %v396_v15 = vld [vmem:[%s395_s30] sm:$0x1]  ;;  %s742_s5 = sld [smem:[#allocation3 + $0x1c]]  ;;  %s408_s7 = scalar_lea.vmem [#allocation5], %s1200_s0 }
  0xab   :  { %v399_v16 = vadd.f32 %v398_v14, %v396_v15  ;;  %s748_s6 = sld [smem:[#allocation4 + $0x1c]]  ;;  %v409_v17 = vld [vmem:[%s408_s7] sm:$0x1]  ;;  %s935_s20 = smov [#allocation10]  }
  0xac   :  { %s749_s2 = sld [smem:[#allocation3 + $0x1d]]  ;;  %s471_s21 = sshll.u32 %s935_s20, 4  ;;  %s472_s21 = int_to_ptr.vmem [resolvable:$true] %s471_s21 }
  0xad   :  { %400 = vst [vmem:[#allocation10 + $0x1a] sm:$0x1] %v399_v16  ;;  %s755_s8 = sld [smem:[#allocation4 + $0x1d]]  ;;  %s901_s0 = scalar_lea.vmem %s472_s21, 512 }
  0xae   :  { %s1065_s9 = sld [smem:[#allocation3 + $0x1e]]  ;;  %s410_s10 = scalar_lea.vmem [#allocation8], %s741_s29 }
  0xaf   :  { %v411_v18 = vld [vmem:[%s410_s10] sm:$0x1]  ;;  %s1067_s11 = sld [smem:[#allocation4 + $0x1e]]  ;;  %p902_p9 = scmp.ne.s32.totalorder %s472_s21, %s901_s0 }
  0xb0   :  { %v412_v19 = vadd.f32 %v411_v18, %v409_v17  ;;  %p416_p1 = scmp.gt.s32.totalorder %s742_s5, 0  ;;  %p743_p2 = scmp.lt.s32.totalorder %s742_s5, 511 }
  0xb1   :  { %s1069_s12 = sld [smem:[#allocation3 + $0x1f]]  ;;  %s423_s3 = scalar_lea.vmem [#allocation8], %s748_s6 }
  0xb2   :  { %413 = vst [vmem:[#allocation10 + $0x1b] sm:$0x1] %v412_v19  ;;  %s1202_s5 = smov (!%p416_p1, %s742_s5), 0  ;;  %p429_p3 = scmp.gt.s32.totalorder %s749_s2, 0  ;;  %v424_v20 = vld [vmem:[%s423_s3] sm:$0x1] }
  0xb3   :  { %p750_p4 = scmp.lt.s32.totalorder %s749_s2, 511  ;;  %s1204_s5 = smov (!%p743_p2, %s1202_s5), 511 }
  0xb4   :  { %s1206_s2 = smov (!%p429_p3, %s749_s2), 0  ;;  %s421_s13 = scalar_lea.vmem [#allocation5], %s1204_s5 }
  0xb5   :  { %v422_v21 = vld [vmem:[%s421_s13] sm:$0x1]  ;;  %s1208_s2 = smov (!%p750_p4, %s1206_s2), 511  ;;  %s436_s14 = scalar_lea.vmem [#allocation8], %s755_s8 }
  0xb6   :  { %v425_v22 = vadd.f32 %v424_v20, %v422_v21  ;;  %v437_v23 = vld [vmem:[%s436_s14] sm:$0x1]  ;;  %p442_p5 = scmp.gt.s32.totalorder %s1065_s9, 0  ;;  %p757_p6 = scmp.lt.s32.totalorder %s1065_s9, 511 }
  0xb7   :  { %s434_s15 = scalar_lea.vmem [#allocation5], %s1208_s2  ;;  %p455_p7 = scmp.gt.s32.totalorder %s1069_s12, 0 }
  0xb8   :  { %426 = vst [vmem:[#allocation10 + $0x1c] sm:$0x1] %v425_v22  ;;  %v435_v24 = vld [vmem:[%s434_s15] sm:$0x1]  ;;  %s1210_s9 = smov (!%p442_p5, %s1065_s9), 0  ;;  %p764_p8 = scmp.lt.s32.totalorder %s1069_s12, 511 }
  0xb9   :  { %v438_v25 = vadd.f32 %v437_v23, %v435_v24  ;;  %s1212_s9 = smov (!%p757_p6, %s1210_s9), 511  ;;  %s449_s16 = scalar_lea.vmem [#allocation8], %s1067_s11 }
  0xba   :  { %v450_v26 = vld [vmem:[%s449_s16] sm:$0x1]  ;;  %s1214_s12 = smov (!%p455_p7, %s1069_s12), 0  ;;  %s769_s17 = sld [smem:[#allocation4 + $0x1f]] }
  0xbb   :  { %439 = vst [vmem:[#allocation10 + $0x1d] sm:$0x1] %v438_v25  ;;  %s447_s18 = scalar_lea.vmem [#allocation5], %s1212_s9  ;;  %s1216_s12 = smov (!%p764_p8, %s1214_s12), 511 }
  0xbc   :  { %v448_v27 = vld [vmem:[%s447_s18] sm:$0x1]  ;;  %s460_s19 = scalar_lea.vmem [#allocation5], %s1216_s12  ;;  %p906_p10 = scmp.lt.s32.totalorder %s472_s21, %s472_s21 }
  0xbd   :  { %v451_v28 = vadd.f32 %v450_v26, %v448_v27  ;;  %v461_v29 = vld [vmem:[%s460_s19] sm:$0x1]  ;;  %p907_p11 = scmp.lt.s32.totalorder %s901_s0, %s901_s0 }
  0xbf   :  { %452 = vst [vmem:[#allocation10 + $0x1e] sm:$0x1] %v451_v28  ;;  %p908_p12 = por %p907_p11, %p906_p10 }
  0xc0   :  { %s462_s22 = scalar_lea.vmem [#allocation8], %s769_s17 }
  0xc1   :  { %v463_v30 = vld [vmem:[%s462_s22] sm:$0x1]  ;;  %p909_p13 = pnand %p908_p12, %p902_p9 }
  0xc2   :  { %v464_v31 = vadd.f32 %v463_v30, %v461_v29 }
  0xc4   :  { %465 = vst [vmem:[#allocation10 + $0x1f] sm:$0x1] %v464_v31 }
  0xc5   :  { %912 = shalt.err (!%p909_p13)
}
  0xc6   :  { %477 = dma.vmem_to_hbm [thread:$0]  %s472_s21, 512, %s1087_s4, [#allocation7], %s932_s24, %s932_s24, %s933_s25  }
  0xc7   :  { %927 = dma.done.wait [#allocation7], 512  }
  0xc8   :  { %928 = vsyncadd [#allocation7], 4294966784 }
  0xc9   :  { %481 = vsyncpa [#allocation6], 1 }
  0xca   :  { %482 = vsyncpa [#allocation9], 1 }
  0xcb   :  { %483 = vsyncpa [#allocation7], 1 }

</bundles_post_ra>
